<compile_context>
chip_gen: v7x
topology: tpu7x:2x2x1
jax: 0.10.0
libtpu: 0.0.40
codegen_flags: <defaults>
</compile_context>

<pallas_src>
import functools
from itertools import combinations

import jax
import jax.numpy as jnp
from jax.experimental import pallas as pl
from jax.experimental.pallas import tpu as pltpu

SKIP_WEIGHT = 0.005
NUM_GROUPS = 2
BN_EPS = 1e-5


def _round_up(x, m):
    return ((x + m - 1) // m) * m


def _pad_to(a, shape):
    return jnp.pad(a, [(0, t - s) for s, t in zip(a.shape, shape)])


def _pick_vmem_limit_bytes():
    """Per-generation VMEM budget (v5e/v6e ~110 MiB, v7x ~56 MiB)."""
    cap = 64 * 1024 * 1024          # conservative fallback (v7x-sized)
    try:
        cap = int(pltpu.get_tpu_info().vmem_capacity_bytes)
    except Exception:
        pass
    return max(32 * 1024 * 1024, min(cap - 8 * 1024 * 1024, 110 * 1024 * 1024))


# --------------------- fully fused GNN forward kernel ---------------------
def gnn_fused_kernel(x0_ref, a_ref, w_ref, b_ref, gw_ref, gb_ref, scale_ref, shift_ref,
                     oh_ref, mwd_ref, mwm_ref, mwx_ref, mb_ref,
                     w1_ref, b1_ref, w2_ref, b2_ref,
                     y_ref, state_ref, *, K, S):
    l = pl.program_id(0)

    # layer 0: load the (padded, bf16) input node features into the resident VMEM state
    @pl.when(l == 0)
    def _init():
        state_ref[...] = x0_ref[...]

    a = a_ref[...]                               # (NP, NP) bf16, resident across layers
    xb = state_ref[...]                          # (NP, HP) bf16 node state

    # TAGConv: out = sum_{k=0..K} (A^k x) W_k + b   (bf16 MXU operands, f32 accumulation)
    out = jnp.dot(xb, w_ref[0, 0], preferred_element_type=jnp.float32)
    h = xb
    for k in range(1, K + 1):
        h = jnp.dot(a, h, preferred_element_type=jnp.float32).astype(jnp.bfloat16)
        out = out + jnp.dot(h, w_ref[0, k], preferred_element_type=jnp.float32)
    out = jnp.maximum(out + b_ref[0], 0.0)       # bias + ReLU; dropout p=0 == identity

    # group "batch_norm": softmax cluster scores, folded eval-mode BN, group sum, skip
    logits = jnp.dot(out.astype(jnp.bfloat16), gw_ref[0],
                     preferred_element_type=jnp.float32) + gb_ref[0]
    logits = logits - jnp.max(logits, axis=1, keepdims=True)
    e = jnp.exp(logits)
    score = e * pl.reciprocal(jnp.sum(e, axis=1, keepdims=True), approx=True)  # (NP, G)

    # mix = sum_g score_g * scale_g  as a single MXU matmul (NP,G)@(G,HP)
    mix = jnp.dot(score.astype(jnp.bfloat16), scale_ref[0],
                  preferred_element_type=jnp.float32)
    # x_temp = sum_g (score_g * out * scale_g + shift_g) ; shift_ref holds sum_g shift_g
    new_x = out + (out * mix + shift_ref[0]) * SKIP_WEIGHT
    state_ref[...] = new_x.astype(jnp.bfloat16)

    # last layer: one-hot MXU gather per set position, pool, merger, FFN — all in VMEM
    @pl.when(l == pl.num_programs(0) - 1)
    def _pool_ffn():
        xb2 = new_x.astype(jnp.bfloat16)
        # xs[s][b, :] = final node state of set_indices_batch[b, s]   (each (BP, HP))
        xs = [jnp.dot(oh_ref[s], xb2, preferred_element_type=jnp.float32)
              for s in range(S)]

        diff = jnp.zeros_like(xs[0])
        for i, j in combinations(range(S), 2):
            diff = diff + jnp.abs(xs[i] - xs[j])
        mean = xs[0]
        mx = xs[0]
        for r in xs[1:]:
            mean = mean + r
            mx = jnp.maximum(mx, r)
        mean = mean * (1.0 / S)

        # merger Linear(3H->H) split into three HPxHP blocks (== cat([diff,mean,max]) @ W)
        m = (jnp.dot(diff.astype(jnp.bfloat16), mwd_ref[...],
                     preferred_element_type=jnp.float32)
             + jnp.dot(mean.astype(jnp.bfloat16), mwm_ref[...],
                       preferred_element_type=jnp.float32)
             + jnp.dot(mx.astype(jnp.bfloat16), mwx_ref[...],
                       preferred_element_type=jnp.float32)
             + mb_ref[...])
        hid = jnp.maximum(
            jnp.dot(m.astype(jnp.bfloat16), w1_ref[...],
                    preferred_element_type=jnp.float32) + b1_ref[...], 0.0)
        y_ref[...] = (jnp.dot(hid.astype(jnp.bfloat16), w2_ref[...],
                              preferred_element_type=jnp.float32) + b2_ref[...])


def gnn_forward(params, x, a_norm, set_indices_batch):
    layers = params["layers"]
    L = len(layers)
    K = layers[0]["K"]
    G = layers[0]["bn_scale"].shape[0]
    N, in_f = x.shape
    hidden = params["ffn1_w"].shape[0]
    out_f = params["ffn2_w"].shape[1]
    B, S = set_indices_batch.shape

    HP = _round_up(max(in_f, hidden), 128)       # lane-dense feature dim
    NP = _round_up(N, 128)                       # MXU-aligned node dim
    OUTP = _round_up(out_f, 128)
    BP = _round_up(B, 8)
    bf16 = jnp.bfloat16
    f32 = jnp.float32

    # host-side zero padding + bf16 weight casts (done once, outside the hot loop)
    x0 = _pad_to(x.astype(f32), (NP, HP)).astype(bf16)
    a_p = _pad_to(a_norm.astype(f32), (NP, NP)).astype(bf16)

    w_stack = jnp.stack([_pad_to(lp["w"], (K + 1, HP, HP)) for lp in layers]).astype(bf16)
    b_stack = jnp.stack([_pad_to(lp["b"], (1, HP)) for lp in layers])
    gw_stack = jnp.stack([_pad_to(lp["gw"], (HP, G)) for lp in layers]).astype(bf16)
    gb_stack = jnp.stack([lp["gb"] for lp in layers])
    scale_stack = jnp.stack([_pad_to(lp["bn_scale"], (G, HP)) for lp in layers]).astype(bf16)
    shift_stack = jnp.stack([
        _pad_to(jnp.sum(lp["bn_shift"], axis=0, keepdims=True), (1, HP)) for lp in layers])

    # per-set-position one-hot gather matrices: (S, BP, NP)
    onehot = jnp.stack([
        _pad_to(jax.nn.one_hot(set_indices_batch[:, s], NP, dtype=f32), (BP, NP))
        for s in range(S)]).astype(bf16)

    mw = params["merger_w"]
    mw_d = _pad_to(mw[0 * hidden:1 * hidden], (HP, HP)).astype(bf16)
    mw_m = _pad_to(mw[1 * hidden:2 * hidden], (HP, HP)).astype(bf16)
    mw_x = _pad_to(mw[2 * hidden:3 * hidden], (HP, HP)).astype(bf16)
    mb = _pad_to(params["merger_b"], (1, HP))
    w1 = _pad_to(params["ffn1_w"], (HP, HP)).astype(bf16)
    b1 = _pad_to(params["ffn1_b"], (1, HP))
    w2 = _pad_to(params["ffn2_w"], (HP, OUTP)).astype(bf16)
    b2 = _pad_to(params["ffn2_b"], (1, OUTP))

    kernel = functools.partial(gnn_fused_kernel, K=K, S=S)

    def vmem_resident():
        # whole-array, single-buffered VMEM residency: the block index never changes,
        # so the second pipeline buffer would be pure VMEM waste (A alone is NP^2 * 2B).
        return pl.BlockSpec(memory_space=pltpu.MemorySpace.VMEM)

    grid_spec = pltpu.PrefetchScalarGridSpec(
        num_scalar_prefetch=0,
        grid=(L,),                                               # layer axis (sequential)
        in_specs=[
            vmem_resident(),                                     # x0 (loaded once)
            vmem_resident(),                                     # A_norm (resident, 1 DMA)
            pl.BlockSpec((1, K + 1, HP, HP), lambda l: (l, 0, 0, 0)),  # TAGConv W_k stack
            pl.BlockSpec((1, 1, HP), lambda l: (l, 0, 0)),       # TAGConv bias
            pl.BlockSpec((1, HP, G), lambda l: (l, 0, 0)),       # group_func weight
            pl.BlockSpec((1, 1, G), lambda l: (l, 0, 0)),        # group_func bias
            pl.BlockSpec((1, G, HP), lambda l: (l, 0, 0)),       # folded BN scale
            pl.BlockSpec((1, 1, HP), lambda l: (l, 0, 0)),       # folded BN shift (summed)
            vmem_resident(),                                     # one-hot gather stack
            vmem_resident(),                                     # merger W (diff block)
            vmem_resident(),                                     # merger W (mean block)
            vmem_resident(),                                     # merger W (max block)
            vmem_resident(),                                     # merger bias
            vmem_resident(),                                     # FFN layer1 W
            vmem_resident(),                                     # FFN layer1 b
            vmem_resident(),                                     # FFN layer2 W
            vmem_resident(),                                     # FFN layer2 b
        ],
        out_specs=pl.BlockSpec((BP, OUTP), lambda l: (0, 0)),
        scratch_shapes=[pltpu.VMEM((NP, HP), jnp.bfloat16)],     # resident node state (bf16)
    )

    # advisory cost hint so XLA schedules the host-side padding/casts against the kernel
    flops = int(2 * L * (K * NP * NP * HP + (K + 1) * NP * HP * HP + 2 * NP * HP * G)
                + 2 * (S * BP * NP * HP + 4 * BP * HP * HP + BP * HP * OUTP))
    bytes_accessed = int(
        NP * NP * 2 + NP * HP * 2 + S * BP * NP * 2
        + L * ((K + 1) * HP * HP * 2 + HP * 4 + HP * G * 2 + G * 4 + G * HP * 2 + HP * 4)
        + (4 * HP * HP + HP * OUTP) * 2 + (3 * HP + OUTP) * 4 + BP * OUTP * 4)
    cost = pl.CostEstimate(flops=flops, transcendentals=int(L * NP * G),
                           bytes_accessed=bytes_accessed)

    y = pl.pallas_call(
        kernel,
        out_shape=jax.ShapeDtypeStruct((BP, OUTP), jnp.float32),
        grid_spec=grid_spec,
        cost_estimate=cost,
        compiler_params=pltpu.CompilerParams(
            dimension_semantics=("arbitrary",),                  # layer axis is sequential
            vmem_limit_bytes=_pick_vmem_limit_bytes()),          # per-generation budget
    )(x0, a_p, w_stack, b_stack, gw_stack, gb_stack, scale_stack, shift_stack,
      onehot, mw_d, mw_m, mw_x, mb, w1, b1, w2, b2)
    return y[:B, :out_f]


# ---------------- deterministic parameter init + graph glue ----------------
def init_params(key, num_layers, in_f, hidden, out_f, K):
    keys = iter(jax.random.split(key, 128))

    def rnd(shape, scale=0.1):
        return scale * jax.random.normal(next(keys), shape, dtype=jnp.float32)

    layers = []
    fin = in_f
    for _ in range(num_layers):
        gamma = 1.0 + rnd((NUM_GROUPS, hidden), 0.05)
        beta = rnd((NUM_GROUPS, hidden), 0.05)
        rmean = rnd((NUM_GROUPS, hidden), 0.05)
        rvar = 1.0 + 0.05 * jax.random.uniform(next(keys), (NUM_GROUPS, hidden),
                                               dtype=jnp.float32)
        bn_scale = gamma / jnp.sqrt(rvar + BN_EPS)
        bn_shift = beta - rmean * bn_scale
        layers.append(dict(
            w=rnd((K + 1, fin, hidden)),              # TAGConv lins (K+1 hops)
            b=rnd((1, hidden)),
            gw=rnd((hidden, NUM_GROUPS)),             # group_func Linear
            gb=rnd((1, NUM_GROUPS)),
            bn_scale=bn_scale, bn_shift=bn_shift, K=K))
        fin = hidden
    return dict(
        layers=layers,
        merger_w=rnd((3 * hidden, hidden)), merger_b=rnd((1, hidden)),
        ffn1_w=rnd((hidden, hidden)), ffn1_b=rnd((1, hidden)),
        ffn2_w=rnd((hidden, out_f)), ffn2_b=rnd((1, out_f)))


def build_graph(num_graphs, nodes_per_graph):
    src, dst = [], []
    for g in range(num_graphs):
        base = g * nodes_per_graph
        for i in range(nodes_per_graph):               # ring graph per component
            j = (i + 1) % nodes_per_graph
            src += [base + i, base + j]
            dst += [base + j, base + i]
    edge_index = jnp.array([src, dst], dtype=jnp.int32)
    batch_vec = jnp.repeat(jnp.arange(num_graphs, dtype=jnp.int32), nodes_per_graph)
    return edge_index, batch_vec, num_graphs * nodes_per_graph


def normalized_adjacency(edge_index, N):
    A = jnp.zeros((N, N), jnp.float32).at[edge_index[0], edge_index[1]].add(1.0)
    deg = A.sum(axis=1)
    dinv = jnp.where(deg > 0, jax.lax.rsqrt(deg), 0.0)
    return dinv[:, None] * A * dinv[None, :]


def set_indices_to_global(set_indices, batch_vec, num_graphs):
    num_nodes = jnp.sum(jax.nn.one_hot(batch_vec, num_graphs, dtype=jnp.float32), axis=0)
    index_bases = jnp.concatenate([jnp.zeros((1,), jnp.int32),
                                   jnp.cumsum(num_nodes.astype(jnp.int32))[:-1]])
    return index_bases[:, None] + set_indices


# ---------------- pure-JAX f32 reference (for correctness check) ----------------
def reference_forward(params, x, a, sib):
    hp = jax.lax.Precision.HIGHEST

    def dot(u, v):
        return jnp.dot(u, v, precision=hp)

    for lp in params["layers"]:
        out = dot(x, lp["w"][0])
        h = x
        for k in range(1, lp["K"] + 1):
            h = dot(a, h)
            out = out + dot(h, lp["w"][k])
        out = jnp.maximum(out + lp["b"], 0.0)
        score = jax.nn.softmax(dot(out, lp["gw"]) + lp["gb"], axis=1)
        x_temp = jnp.zeros_like(out)
        for g in range(NUM_GROUPS):
            xg = score[:, g:g + 1] * out
            x_temp = x_temp + xg * lp["bn_scale"][g:g + 1] + lp["bn_shift"][g:g + 1]
        x = out + x_temp * SKIP_WEIGHT
    xs = x[sib]
    S = xs.shape[1]
    x_diff = jnp.zeros_like(xs[:, 0, :])
    for i, j in combinations(range(S), 2):
        x_diff = x_diff + jnp.abs(xs[:, i] - xs[:, j])
    cat = jnp.concatenate([x_diff, xs.mean(1), xs.max(1)], axis=-1)
    m = dot(cat, params["merger_w"]) + params["merger_b"]
    h = jnp.maximum(dot(m, params["ffn1_w"]) + params["ffn1_b"], 0.0)
    return dot(h, params["ffn2_w"]) + params["ffn2_b"]


if __name__ == "__main__":
    num_layers, in_f, hidden, out_f, K = 2, 8, 32, 4, 2
    num_graphs, nodes_per_graph, set_size = 2, 8, 2

    key = jax.random.PRNGKey(0)
    kx, kp = jax.random.split(key)

    edge_index, batch_vec, N = build_graph(num_graphs, nodes_per_graph)
    x = jax.random.normal(kx, (N, in_f), dtype=jnp.float32)
    a_norm = normalized_adjacency(edge_index, N)
    set_indices = jnp.array([[0, 3], [1, 5]], dtype=jnp.int32)   # (num_graphs, set_size)
    sib = set_indices_to_global(set_indices, batch_vec, num_graphs)

    params = init_params(kp, num_layers, in_f, hidden, out_f, K)

    out = gnn_forward(params, x, a_norm, sib)
    out = jax.block_until_ready(out)

    ref = reference_forward(params, x, a_norm, sib)
    assert out.shape == (num_graphs, out_f), out.shape
    # bf16 MXU operands + bf16 resident state vs. pure-f32 reference -> loosened tolerance
    assert jnp.allclose(out, ref, atol=5e-2, rtol=5e-2), (out, ref,
                                                          jnp.max(jnp.abs(out - ref)))

    print("KERNEL_OK")
</pallas_src>

<mosaic_0001>
module attributes {stable_mosaic.version = 11 : i64} {
  func.func @gnn_fused_kernel(%arg0: i32, %arg1: memref<128x128xbf16, #tpu.memory_space<vmem>>, %arg2: memref<128x128xbf16, #tpu.memory_space<vmem>>, %arg3: memref<1x3x128x128xbf16, #tpu.memory_space<vmem>>, %arg4: memref<1x1x128xf32, #tpu.memory_space<vmem>>, %arg5: memref<1x128x2xbf16, #tpu.memory_space<vmem>>, %arg6: memref<1x1x2xf32, #tpu.memory_space<vmem>>, %arg7: memref<1x2x128xbf16, #tpu.memory_space<vmem>>, %arg8: memref<1x1x128xf32, #tpu.memory_space<vmem>>, %arg9: memref<2x8x128xbf16, #tpu.memory_space<vmem>>, %arg10: memref<128x128xbf16, #tpu.memory_space<vmem>>, %arg11: memref<128x128xbf16, #tpu.memory_space<vmem>>, %arg12: memref<128x128xbf16, #tpu.memory_space<vmem>>, %arg13: memref<1x128xf32, #tpu.memory_space<vmem>>, %arg14: memref<128x128xbf16, #tpu.memory_space<vmem>>, %arg15: memref<1x128xf32, #tpu.memory_space<vmem>>, %arg16: memref<128x128xbf16, #tpu.memory_space<vmem>>, %arg17: memref<1x128xf32, #tpu.memory_space<vmem>>, %arg18: memref<8x128xf32, #tpu.memory_space<vmem>>, %arg19: memref<128x128xbf16, #tpu.memory_space<vmem>>) attributes {dimension_semantics = [#tpu.dimension_semantics<arbitrary>], iteration_bounds = array<i64: 2>, scalar_prefetch = 0 : i64, scratch_operands = 1 : i64, tpu.core_type = #tpu.core_type<tc>, window_params = [{pipeline_mode = #tpu.pipeline_mode<synchronous>, transform_indices = @transform_0, window_bounds = array<i64: 128, 128>}, {pipeline_mode = #tpu.pipeline_mode<synchronous>, transform_indices = @transform_1, window_bounds = array<i64: 128, 128>}, {transform_indices = @transform_2, window_bounds = array<i64: 1, 3, 128, 128>}, {transform_indices = @transform_3, window_bounds = array<i64: 1, 1, 128>}, {transform_indices = @transform_4, window_bounds = array<i64: 1, 128, 2>}, {transform_indices = @transform_5, window_bounds = array<i64: 1, 1, 2>}, {transform_indices = @transform_6, window_bounds = array<i64: 1, 2, 128>}, {transform_indices = @transform_7, window_bounds = array<i64: 1, 1, 128>}, {pipeline_mode = #tpu.pipeline_mode<synchronous>, transform_indices = @transform_8, window_bounds = array<i64: 2, 8, 128>}, {pipeline_mode = #tpu.pipeline_mode<synchronous>, transform_indices = @transform_9, window_bounds = array<i64: 128, 128>}, {pipeline_mode = #tpu.pipeline_mode<synchronous>, transform_indices = @transform_10, window_bounds = array<i64: 128, 128>}, {pipeline_mode = #tpu.pipeline_mode<synchronous>, transform_indices = @transform_11, window_bounds = array<i64: 128, 128>}, {pipeline_mode = #tpu.pipeline_mode<synchronous>, transform_indices = @transform_12, window_bounds = array<i64: 1, 128>}, {pipeline_mode = #tpu.pipeline_mode<synchronous>, transform_indices = @transform_13, window_bounds = array<i64: 128, 128>}, {pipeline_mode = #tpu.pipeline_mode<synchronous>, transform_indices = @transform_14, window_bounds = array<i64: 1, 128>}, {pipeline_mode = #tpu.pipeline_mode<synchronous>, transform_indices = @transform_15, window_bounds = array<i64: 128, 128>}, {pipeline_mode = #tpu.pipeline_mode<synchronous>, transform_indices = @transform_16, window_bounds = array<i64: 1, 128>}, {pipeline_mode = #tpu.pipeline_mode<synchronous>, transform_indices = @transform_17, window_bounds = array<i64: 8, 128>}]} {
    %c0_i32 = arith.constant 0 : i32
    %0 = arith.cmpi eq, %arg0, %c0_i32 : i32
    %1 = arith.extui %0 : i1 to i32
    %c0_i32_0 = arith.constant 0 : i32
    %2 = arith.cmpi ne, %1, %c0_i32_0 : i32
    scf.if %2 {
      %c0_42 = arith.constant 0 : index
      %c0_43 = arith.constant 0 : index
      %61 = vector.load %arg1[%c0_42, %c0_43] : memref<128x128xbf16, #tpu.memory_space<vmem>>, vector<128x128xbf16>
      %c0_44 = arith.constant 0 : index
      %c0_45 = arith.constant 0 : index
      %62 = vector.load %arg19[%c0_44, %c0_45] : memref<128x128xbf16, #tpu.memory_space<vmem>>, vector<128x128xbf16>
      tpu.vector_store %arg19[%c0_44, %c0_45], %61 {strides = array<i32>} : memref<128x128xbf16, #tpu.memory_space<vmem>>, vector<128x128xbf16>,
    } else {
    }
    %c0 = arith.constant 0 : index
    %c0_1 = arith.constant 0 : index
    %3 = vector.load %arg2[%c0, %c0_1] : memref<128x128xbf16, #tpu.memory_space<vmem>>, vector<128x128xbf16>
    %c0_2 = arith.constant 0 : index
    %c0_3 = arith.constant 0 : index
    %4 = vector.load %arg19[%c0_2, %c0_3] : memref<128x128xbf16, #tpu.memory_space<vmem>>, vector<128x128xbf16>
    %c0_4 = arith.constant 0 : index
    %c0_5 = arith.constant 0 : index
    %c0_6 = arith.constant 0 : index
    %c0_7 = arith.constant 0 : index
    %5 = vector.load %arg3[%c0_4, %c0_5, %c0_6, %c0_7] : memref<1x3x128x128xbf16, #tpu.memory_space<vmem>>, vector<1x1x128x128xbf16>
    %6 = vector.shape_cast %5 : vector<1x1x128x128xbf16> to vector<128x128xbf16>
    %cst = arith.constant dense<0.000000e+00> : vector<128x128xf32>
    %7 = tpu.matmul %4, %6, %cst {dimension_numbers = #tpu.dot_dimension_numbers<[1], [0], [0], [1], [0, 0, 1, 1], [], []>} : vector<128x128xbf16>, vector<128x128xbf16>, vector<128x128xf32> -> vector<128x128xf32>
    %cst_8 = arith.constant dense<0.000000e+00> : vector<128x128xf32>
    %8 = tpu.matmul %3, %4, %cst_8 {dimension_numbers = #tpu.dot_dimension_numbers<[1], [0], [0], [1], [0, 0, 1, 1], [], []>} : vector<128x128xbf16>, vector<128x128xbf16>, vector<128x128xf32> -> vector<128x128xf32>
    %9 = arith.truncf %8 : vector<128x128xf32> to vector<128x128xbf16>
    %c0_9 = arith.constant 0 : index
    %c1 = arith.constant 1 : index
    %c0_10 = arith.constant 0 : index
    %c0_11 = arith.constant 0 : index
    %10 = vector.load %arg3[%c0_9, %c1, %c0_10, %c0_11] : memref<1x3x128x128xbf16, #tpu.memory_space<vmem>>, vector<1x1x128x128xbf16>
    %11 = vector.shape_cast %10 : vector<1x1x128x128xbf16> to vector<128x128xbf16>
    %cst_12 = arith.constant dense<0.000000e+00> : vector<128x128xf32>
    %12 = tpu.matmul %9, %11, %cst_12 {dimension_numbers = #tpu.dot_dimension_numbers<[1], [0], [0], [1], [0, 0, 1, 1], [], []>} : vector<128x128xbf16>, vector<128x128xbf16>, vector<128x128xf32> -> vector<128x128xf32>
    %13 = arith.addf %7, %12 : vector<128x128xf32>
    %cst_13 = arith.constant dense<0.000000e+00> : vector<128x128xf32>
    %14 = tpu.matmul %3, %9, %cst_13 {dimension_numbers = #tpu.dot_dimension_numbers<[1], [0], [0], [1], [0, 0, 1, 1], [], []>} : vector<128x128xbf16>, vector<128x128xbf16>, vector<128x128xf32> -> vector<128x128xf32>
    %15 = arith.truncf %14 : vector<128x128xf32> to vector<128x128xbf16>
    %c0_14 = arith.constant 0 : index
    %c2 = arith.constant 2 : index
    %c0_15 = arith.constant 0 : index
    %c0_16 = arith.constant 0 : index
    %16 = vector.load %arg3[%c0_14, %c2, %c0_15, %c0_16] : memref<1x3x128x128xbf16, #tpu.memory_space<vmem>>, vector<1x1x128x128xbf16>
    %17 = vector.shape_cast %16 : vector<1x1x128x128xbf16> to vector<128x128xbf16>
    %cst_17 = arith.constant dense<0.000000e+00> : vector<128x128xf32>
    %18 = tpu.matmul %15, %17, %cst_17 {dimension_numbers = #tpu.dot_dimension_numbers<[1], [0], [0], [1], [0, 0, 1, 1], [], []>} : vector<128x128xbf16>, vector<128x128xbf16>, vector<128x128xf32> -> vector<128x128xf32>
    %19 = arith.addf %13, %18 : vector<128x128xf32>
    %c0_18 = arith.constant 0 : index
    %c0_19 = arith.constant 0 : index
    %c0_20 = arith.constant 0 : index
    %20 = vector.load %arg4[%c0_18, %c0_19, %c0_20] : memref<1x1x128xf32, #tpu.memory_space<vmem>>, vector<1x1x128xf32>
    %21 = vector.shape_cast %20 : vector<1x1x128xf32> to vector<1x128xf32>
    %22 = vector.broadcast %21 : vector<1x128xf32> to vector<128x128xf32>
    %23 = arith.addf %19, %22 : vector<128x128xf32>
    %cst_21 = arith.constant 0.000000e+00 : f32
    %24 = vector.broadcast %cst_21 : f32 to vector<128x128xf32>
    %25 = arith.maximumf %23, %24 : vector<128x128xf32>
    %26 = arith.truncf %25 : vector<128x128xf32> to vector<128x128xbf16>
    %c0_22 = arith.constant 0 : index
    %c0_23 = arith.constant 0 : index
    %c0_24 = arith.constant 0 : index
    %27 = vector.load %arg5[%c0_22, %c0_23, %c0_24] : memref<1x128x2xbf16, #tpu.memory_space<vmem>>, vector<1x128x2xbf16>
    %28 = vector.shape_cast %27 : vector<1x128x2xbf16> to vector<128x2xbf16>
    %cst_25 = arith.constant dense<0.000000e+00> : vector<128x2xf32>
    %29 = tpu.matmul %26, %28, %cst_25 {dimension_numbers = #tpu.dot_dimension_numbers<[1], [0], [0], [1], [0, 0, 1, 1], [], []>} : vector<128x128xbf16>, vector<128x2xbf16>, vector<128x2xf32> -> vector<128x2xf32>
    %c0_26 = arith.constant 0 : index
    %c0_27 = arith.constant 0 : index
    %c0_28 = arith.constant 0 : index
    %30 = vector.load %arg6[%c0_26, %c0_27, %c0_28] : memref<1x1x2xf32, #tpu.memory_space<vmem>>, vector<1x1x2xf32>
    %31 = vector.shape_cast %30 : vector<1x1x2xf32> to vector<1x2xf32>
    %32 = vector.broadcast %31 : vector<1x2xf32> to vector<128x2xf32>
    %33 = arith.addf %29, %32 : vector<128x2xf32>
    %cst_29 = arith.constant dense<0xFF800000> : vector<128xf32>
    %34 = vector.multi_reduction <maximumf>, %33, %cst_29 [1] : vector<128x2xf32> to vector<128xf32>
    %35 = vector.shape_cast %34 : vector<128xf32> to vector<128x1xf32>
    %36 = vector.broadcast %35 : vector<128x1xf32> to vector<128x2xf32>
    %37 = arith.subf %33, %36 : vector<128x2xf32>
    %38 = math.exp %37 : vector<128x2xf32>
    %cst_30 = arith.constant dense<0.000000e+00> : vector<128xf32>
    %39 = vector.multi_reduction <add>, %38, %cst_30 [1] : vector<128x2xf32> to vector<128xf32>
    %40 = vector.shape_cast %39 : vector<128xf32> to vector<128x1xf32>
    %41 = tpu.reciprocal %40 {approx = true} : vector<128x1xf32> -> vector<128x1xf32>
    %42 = vector.broadcast %41 : vector<128x1xf32> to vector<128x2xf32>
    %43 = arith.mulf %38, %42 : vector<128x2xf32>
    %44 = arith.truncf %43 : vector<128x2xf32> to vector<128x2xbf16>
    %c0_31 = arith.constant 0 : index
    %c0_32 = arith.constant 0 : index
    %c0_33 = arith.constant 0 : index
    %45 = vector.load %arg7[%c0_31, %c0_32, %c0_33] : memref<1x2x128xbf16, #tpu.memory_space<vmem>>, vector<1x2x128xbf16>
    %46 = vector.shape_cast %45 : vector<1x2x128xbf16> to vector<2x128xbf16>
    %cst_34 = arith.constant dense<0.000000e+00> : vector<128x128xf32>
    %47 = tpu.matmul %44, %46, %cst_34 {dimension_numbers = #tpu.dot_dimension_numbers<[1], [0], [0], [1], [0, 0, 1, 1], [], []>} : vector<128x2xbf16>, vector<2x128xbf16>, vector<128x128xf32> -> vector<128x128xf32>
    %48 = arith.mulf %25, %47 : vector<128x128xf32>
    %c0_35 = arith.constant 0 : index
    %c0_36 = arith.constant 0 : index
    %c0_37 = arith.constant 0 : index
    %49 = vector.load %arg8[%c0_35, %c0_36, %c0_37] : memref<1x1x128xf32, #tpu.memory_space<vmem>>, vector<1x1x128xf32>
    %50 = vector.shape_cast %49 : vector<1x1x128xf32> to vector<1x128xf32>
    %51 = vector.broadcast %50 : vector<1x128xf32> to vector<128x128xf32>
    %52 = arith.addf %48, %51 : vector<128x128xf32>
    %cst_38 = arith.constant 5.000000e-03 : f32
    %53 = vector.broadcast %cst_38 : f32 to vector<128x128xf32>
    %54 = arith.mulf %52, %53 : vector<128x128xf32>
    %55 = arith.addf %25, %54 : vector<128x128xf32>
    %56 = arith.truncf %55 : vector<128x128xf32> to vector<128x128xbf16>
    %c0_39 = arith.constant 0 : index
    %c0_40 = arith.constant 0 : index
    %57 = vector.load %arg19[%c0_39, %c0_40] : memref<128x128xbf16, #tpu.memory_space<vmem>>, vector<128x128xbf16>
    tpu.vector_store %arg19[%c0_39, %c0_40], %56 {strides = array<i32>} : memref<128x128xbf16, #tpu.memory_space<vmem>>, vector<128x128xbf16>,
    %c1_i32 = arith.constant 1 : i32
    %58 = arith.cmpi eq, %arg0, %c1_i32 : i32
    %59 = arith.extui %58 : i1 to i32
    %c0_i32_41 = arith.constant 0 : i32
    %60 = arith.cmpi ne, %59, %c0_i32_41 : i32
    scf.if %60 {
      %61 = arith.truncf %55 : vector<128x128xf32> to vector<128x128xbf16>
      %c0_42 = arith.constant 0 : index
      %c0_43 = arith.constant 0 : index
      %c0_44 = arith.constant 0 : index
      %62 = vector.load %arg9[%c0_42, %c0_43, %c0_44] : memref<2x8x128xbf16, #tpu.memory_space<vmem>>, vector<1x8x128xbf16>
      %63 = vector.shape_cast %62 : vector<1x8x128xbf16> to vector<8x128xbf16>
      %cst_45 = arith.constant dense<0.000000e+00> : vector<8x128xf32>
      %64 = tpu.matmul %63, %61, %cst_45 {dimension_numbers = #tpu.dot_dimension_numbers<[1], [0], [0], [1], [0, 0, 1, 1], [], []>} : vector<8x128xbf16>, vector<128x128xbf16>, vector<8x128xf32> -> vector<8x128xf32>
      %c1_46 = arith.constant 1 : index
      %c0_47 = arith.constant 0 : index
      %c0_48 = arith.constant 0 : index
      %65 = vector.load %arg9[%c1_46, %c0_47, %c0_48] : memref<2x8x128xbf16, #tpu.memory_space<vmem>>, vector<1x8x128xbf16>
      %66 = vector.shape_cast %65 : vector<1x8x128xbf16> to vector<8x128xbf16>
      %cst_49 = arith.constant dense<0.000000e+00> : vector<8x128xf32>
      %67 = tpu.matmul %66, %61, %cst_49 {dimension_numbers = #tpu.dot_dimension_numbers<[1], [0], [0], [1], [0, 0, 1, 1], [], []>} : vector<8x128xbf16>, vector<128x128xbf16>, vector<8x128xf32> -> vector<8x128xf32>
      %cst_50 = arith.constant 0.000000e+00 : f32
      %68 = vector.broadcast %cst_50 : f32 to vector<8x128xf32>
      %69 = arith.subf %64, %67 : vector<8x128xf32>
      %70 = math.absf %69 : vector<8x128xf32>
      %71 = arith.addf %68, %70 : vector<8x128xf32>
      %72 = arith.addf %64, %67 : vector<8x128xf32>
      %73 = arith.maximumf %64, %67 : vector<8x128xf32>
      %cst_51 = arith.constant 5.000000e-01 : f32
      %74 = vector.broadcast %cst_51 : f32 to vector<8x128xf32>
      %75 = arith.mulf %72, %74 : vector<8x128xf32>
      %76 = arith.truncf %71 : vector<8x128xf32> to vector<8x128xbf16>
      %c0_52 = arith.constant 0 : index
      %c0_53 = arith.constant 0 : index
      %77 = vector.load %arg10[%c0_52, %c0_53] : memref<128x128xbf16, #tpu.memory_space<vmem>>, vector<128x128xbf16>
      %cst_54 = arith.constant dense<0.000000e+00> : vector<8x128xf32>
      %78 = tpu.matmul %76, %77, %cst_54 {dimension_numbers = #tpu.dot_dimension_numbers<[1], [0], [0], [1], [0, 0, 1, 1], [], []>} : vector<8x128xbf16>, vector<128x128xbf16>, vector<8x128xf32> -> vector<8x128xf32>
      %79 = arith.truncf %75 : vector<8x128xf32> to vector<8x128xbf16>
      %c0_55 = arith.constant 0 : index
      %c0_56 = arith.constant 0 : index
      %80 = vector.load %arg11[%c0_55, %c0_56] : memref<128x128xbf16, #tpu.memory_space<vmem>>, vector<128x128xbf16>
      %cst_57 = arith.constant dense<0.000000e+00> : vector<8x128xf32>
      %81 = tpu.matmul %79, %80, %cst_57 {dimension_numbers = #tpu.dot_dimension_numbers<[1], [0], [0], [1], [0, 0, 1, 1], [], []>} : vector<8x128xbf16>, vector<128x128xbf16>, vector<8x128xf32> -> vector<8x128xf32>
      %82 = arith.addf %78, %81 : vector<8x128xf32>
      %83 = arith.truncf %73 : vector<8x128xf32> to vector<8x128xbf16>
      %c0_58 = arith.constant 0 : index
      %c0_59 = arith.constant 0 : index
      %84 = vector.load %arg12[%c0_58, %c0_59] : memref<128x128xbf16, #tpu.memory_space<vmem>>, vector<128x128xbf16>
      %cst_60 = arith.constant dense<0.000000e+00> : vector<8x128xf32>
      %85 = tpu.matmul %83, %84, %cst_60 {dimension_numbers = #tpu.dot_dimension_numbers<[1], [0], [0], [1], [0, 0, 1, 1], [], []>} : vector<8x128xbf16>, vector<128x128xbf16>, vector<8x128xf32> -> vector<8x128xf32>
      %86 = arith.addf %82, %85 : vector<8x128xf32>
      %c0_61 = arith.constant 0 : index
      %c0_62 = arith.constant 0 : index
      %87 = vector.load %arg13[%c0_61, %c0_62] : memref<1x128xf32, #tpu.memory_space<vmem>>, vector<1x128xf32>
      %88 = vector.broadcast %87 : vector<1x128xf32> to vector<8x128xf32>
      %89 = arith.addf %86, %88 : vector<8x128xf32>
      %90 = arith.truncf %89 : vector<8x128xf32> to vector<8x128xbf16>
      %c0_63 = arith.constant 0 : index
      %c0_64 = arith.constant 0 : index
      %91 = vector.load %arg14[%c0_63, %c0_64] : memref<128x128xbf16, #tpu.memory_space<vmem>>, vector<128x128xbf16>
      %cst_65 = arith.constant dense<0.000000e+00> : vector<8x128xf32>
      %92 = tpu.matmul %90, %91, %cst_65 {dimension_numbers = #tpu.dot_dimension_numbers<[1], [0], [0], [1], [0, 0, 1, 1], [], []>} : vector<8x128xbf16>, vector<128x128xbf16>, vector<8x128xf32> -> vector<8x128xf32>
      %c0_66 = arith.constant 0 : index
      %c0_67 = arith.constant 0 : index
      %93 = vector.load %arg15[%c0_66, %c0_67] : memref<1x128xf32, #tpu.memory_space<vmem>>, vector<1x128xf32>
      %94 = vector.broadcast %93 : vector<1x128xf32> to vector<8x128xf32>
      %95 = arith.addf %92, %94 : vector<8x128xf32>
      %cst_68 = arith.constant 0.000000e+00 : f32
      %96 = vector.broadcast %cst_68 : f32 to vector<8x128xf32>
      %97 = arith.maximumf %95, %96 : vector<8x128xf32>
      %98 = arith.truncf %97 : vector<8x128xf32> to vector<8x128xbf16>
      %c0_69 = arith.constant 0 : index
      %c0_70 = arith.constant 0 : index
      %99 = vector.load %arg16[%c0_69, %c0_70] : memref<128x128xbf16, #tpu.memory_space<vmem>>, vector<128x128xbf16>
      %cst_71 = arith.constant dense<0.000000e+00> : vector<8x128xf32>
      %100 = tpu.matmul %98, %99, %cst_71 {dimension_numbers = #tpu.dot_dimension_numbers<[1], [0], [0], [1], [0, 0, 1, 1], [], []>} : vector<8x128xbf16>, vector<128x128xbf16>, vector<8x128xf32> -> vector<8x128xf32>
      %c0_72 = arith.constant 0 : index
      %c0_73 = arith.constant 0 : index
      %101 = vector.load %arg17[%c0_72, %c0_73] : memref<1x128xf32, #tpu.memory_space<vmem>>, vector<1x128xf32>
      %102 = vector.broadcast %101 : vector<1x128xf32> to vector<8x128xf32>
      %103 = arith.addf %100, %102 : vector<8x128xf32>
      %c0_74 = arith.constant 0 : index
      %c0_75 = arith.constant 0 : index
      %104 = vector.load %arg18[%c0_74, %c0_75] : memref<8x128xf32, #tpu.memory_space<vmem>>, vector<8x128xf32>
      tpu.vector_store %arg18[%c0_74, %c0_75], %103 {strides = array<i32>} : memref<8x128xf32, #tpu.memory_space<vmem>>, vector<8x128xf32>,
    } else {
    }
    return
  }
  func.func @transform_0(%arg0: i32) -> (i32, i32) {
    %c0_i32 = arith.constant 0 : i32
    %c0_i32_0 = arith.constant 0 : i32
    %c0_i32_1 = arith.constant 0 : i32
    return %c0_i32, %c0_i32_0 : i32, i32
  }
  func.func @transform_1(%arg0: i32) -> (i32, i32) {
    %c0_i32 = arith.constant 0 : i32
    %c0_i32_0 = arith.constant 0 : i32
    %c0_i32_1 = arith.constant 0 : i32
    return %c0_i32, %c0_i32_0 : i32, i32
  }
  func.func @transform_2(%arg0: i32) -> (i32, i32, i32, i32) {
    %c0_i32 = arith.constant 0 : i32
    %c0_i32_0 = arith.constant 0 : i32
    %c0_i32_1 = arith.constant 0 : i32
    %c0_i32_2 = arith.constant 0 : i32
    return %arg0, %c0_i32, %c0_i32_0, %c0_i32_1 : i32, i32, i32, i32
  }
  func.func @transform_3(%arg0: i32) -> (i32, i32, i32) {
    %c0_i32 = arith.constant 0 : i32
    %c0_i32_0 = arith.constant 0 : i32
    %c0_i32_1 = arith.constant 0 : i32
    return %arg0, %c0_i32, %c0_i32_0 : i32, i32, i32
  }
  func.func @transform_4(%arg0: i32) -> (i32, i32, i32) {
    %c0_i32 = arith.constant 0 : i32
    %c0_i32_0 = arith.constant 0 : i32
    %c0_i32_1 = arith.constant 0 : i32
    return %arg0, %c0_i32, %c0_i32_0 : i32, i32, i32
  }
  func.func @transform_5(%arg0: i32) -> (i32, i32, i32) {
    %c0_i32 = arith.constant 0 : i32
    %c0_i32_0 = arith.constant 0 : i32
    %c0_i32_1 = arith.constant 0 : i32
    return %arg0, %c0_i32, %c0_i32_0 : i32, i32, i32
  }
  func.func @transform_6(%arg0: i32) -> (i32, i32, i32) {
    %c0_i32 = arith.constant 0 : i32
    %c0_i32_0 = arith.constant 0 : i32
    %c0_i32_1 = arith.constant 0 : i32
    return %arg0, %c0_i32, %c0_i32_0 : i32, i32, i32
  }
  func.func @transform_7(%arg0: i32) -> (i32, i32, i32) {
    %c0_i32 = arith.constant 0 : i32
    %c0_i32_0 = arith.constant 0 : i32
    %c0_i32_1 = arith.constant 0 : i32
    return %arg0, %c0_i32, %c0_i32_0 : i32, i32, i32
  }
  func.func @transform_8(%arg0: i32) -> (i32, i32, i32) {
    %c0_i32 = arith.constant 0 : i32
    %c0_i32_0 = arith.constant 0 : i32
    %c0_i32_1 = arith.constant 0 : i32
    %c0_i32_2 = arith.constant 0 : i32
    return %c0_i32, %c0_i32_0, %c0_i32_1 : i32, i32, i32
  }
  func.func @transform_9(%arg0: i32) -> (i32, i32) {
    %c0_i32 = arith.constant 0 : i32
    %c0_i32_0 = arith.constant 0 : i32
    %c0_i32_1 = arith.constant 0 : i32
    return %c0_i32, %c0_i32_0 : i32, i32
  }
  func.func @transform_10(%arg0: i32) -> (i32, i32) {
    %c0_i32 = arith.constant 0 : i32
    %c0_i32_0 = arith.constant 0 : i32
    %c0_i32_1 = arith.constant 0 : i32
    return %c0_i32, %c0_i32_0 : i32, i32
  }
  func.func @transform_11(%arg0: i32) -> (i32, i32) {
    %c0_i32 = arith.constant 0 : i32
    %c0_i32_0 = arith.constant 0 : i32
    %c0_i32_1 = arith.constant 0 : i32
    return %c0_i32, %c0_i32_0 : i32, i32
  }
  func.func @transform_12(%arg0: i32) -> (i32, i32) {
    %c0_i32 = arith.constant 0 : i32
    %c0_i32_0 = arith.constant 0 : i32
    %c0_i32_1 = arith.constant 0 : i32
    return %c0_i32, %c0_i32_0 : i32, i32
  }
  func.func @transform_13(%arg0: i32) -> (i32, i32) {
    %c0_i32 = arith.constant 0 : i32
    %c0_i32_0 = arith.constant 0 : i32
    %c0_i32_1 = arith.constant 0 : i32
    return %c0_i32, %c0_i32_0 : i32, i32
  }
  func.func @transform_14(%arg0: i32) -> (i32, i32) {
    %c0_i32 = arith.constant 0 : i32
    %c0_i32_0 = arith.constant 0 : i32
    %c0_i32_1 = arith.constant 0 : i32
    return %c0_i32, %c0_i32_0 : i32, i32
  }
  func.func @transform_15(%arg0: i32) -> (i32, i32) {
    %c0_i32 = arith.constant 0 : i32
    %c0_i32_0 = arith.constant 0 : i32
    %c0_i32_1 = arith.constant 0 : i32
    return %c0_i32, %c0_i32_0 : i32, i32
  }
  func.func @transform_16(%arg0: i32) -> (i32, i32) {
    %c0_i32 = arith.constant 0 : i32
    %c0_i32_0 = arith.constant 0 : i32
    %c0_i32_1 = arith.constant 0 : i32
    return %c0_i32, %c0_i32_0 : i32, i32
  }
  func.func @transform_17(%arg0: i32) -> (i32, i32) {
    %c0_i32 = arith.constant 0 : i32
    %c0_i32_0 = arith.constant 0 : i32
    %c0_i32_1 = arith.constant 0 : i32
    return %c0_i32, %c0_i32_0 : i32, i32
  }
}

</mosaic_0001>

<bundles_post_ra>
// kernel: tpu_custom_call.1
= control target key start
LH: loop header
LB: loop body
LE: loop exit
PB: predicated region body
PF: predicated region fallthrough
CT: control target
= control target key end

     0   :  { %s5160_s0 = inlined_call_operand.vmem [shape: bf16[128,128], index: 0, kind: input, shape index: {}]   ;;  %s5161_s1 = inlined_call_operand.vmem [shape: bf16[128,128], index: 1, kind: input, shape index: {}]   ;;  %s5162_s2 = inlined_call_operand.hbm [shape: bf16[2,3,128,128], index: 2, kind: input, shape index: {}]   ;;  %s5163_s3 = inlined_call_operand.vmem [shape: f32[2,1,128], index: 3, kind: input, shape index: {}]   ;;  %s5164_s4 = inlined_call_operand.vmem [shape: bf16[2,128,2], index: 4, kind: input, shape index: {}]   ;;  %s5165_s5 = inlined_call_operand.vmem [shape: f32[2,1,2], index: 5, kind: input, shape index: {}]   ;;  %s5166_s6 = inlined_call_operand.vmem [shape: bf16[2,2,128], index: 6, kind: input, shape index: {}]   ;;  %s5167_s7 = inlined_call_operand.vmem [shape: f32[2,1,128], index: 7, kind: input, shape index: {}]   ;;  %s5168_s8 = inlined_call_operand.vmem [shape: bf16[2,8,128], index: 8, kind: input, shape index: {}]   ;;  %s5169_s9 = inlined_call_operand.hbm [shape: bf16[128,128], index: 9, kind: input, shape index: {}]   ;;  %s5170_s10 = inlined_call_operand.hbm [shape: bf16[128,128], index: 10, kind: input, shape index: {}]   ;;  %s5171_s11 = inlined_call_operand.hbm [shape: bf16[128,128], index: 11, kind: input, shape index: {}]   ;;  %s5172_s12 = inlined_call_operand.vmem [shape: f32[1,128], index: 12, kind: input, shape index: {}]   ;;  %s5173_s13 = inlined_call_operand.hbm [shape: bf16[128,128], index: 13, kind: input, shape index: {}]   ;;  %s5174_s14 = inlined_call_operand.vmem [shape: f32[1,128], index: 14, kind: input, shape index: {}]   ;;  %s5175_s15 = inlined_call_operand.hbm [shape: bf16[128,128], index: 15, kind: input, shape index: {}]   ;;  %s5176_s16 = inlined_call_operand.vmem [shape: f32[1,128], index: 16, kind: input, shape index: {}]   ;;  %s5177_s17 = inlined_call_operand.hbm [shape: f32[8,128], index: 17, kind: output, shape index: {}]  }
   0x1   :  { %5184 = sst [smem:[#allocation20_spill]] %s5160_s0 }
   0x2   :  { %5185 = sst [smem:[#allocation21_spill]] %s5161_s1 }
   0x3   :  { %5186 = sst [smem:[#allocation22_spill]] %s5162_s2 }
   0x4   :  { %5187 = sst [smem:[#allocation23_spill]] %s5164_s4 }
   0x5   :  { %5188 = sst [smem:[#allocation24_spill]] %s5166_s6 }
   0x6   :  { %5189 = sst [smem:[#allocation25_spill]] %s5167_s7 }
   0x7   :  { %5190 = sst [smem:[#allocation26_spill]] %s5168_s8 }
   0x8   :  { %5191 = sst [smem:[#allocation27_spill]] %s5169_s9 }
   0x9   :  { %5192 = sst [smem:[#allocation28_spill]] %s5172_s12 }
   0xa   :  { %5193 = sst [smem:[#allocation29_spill]] %s5174_s14 }
   0xb   :  { %5194 = sst [smem:[#allocation30_spill]] %s5176_s16 }
   0xc   :  { %5195 = sst [smem:[#allocation31_spill]] %s5177_s17 }
   0xd   :  { %22 = vsyncpa [#allocation4], 0 }
   0xe   :  { %24 = vsyncpa [#allocation4 + $0x1], 0 }
   0xf   :  { %25 = vsyncpa [#allocation7], 0 }
  0x10   :  { %26 = vsyncpa [#allocation10], 0 }
  0x11   :  { %27 = vsyncpa [#allocation13], 0 }
  0x12   :  { %28 = vsyncpa [#allocation5], 0  ;;  %s4304_s24 = smov 0   ;;  %s4306_s25 = smov 0  }
  0x13   :  { %s4308_s26 = smov 0   ;;  %s4310_s27 = smov 0  }
  0x14 LB: > { %s4203_s28 = smov [#allocation6]   ;;  %s4325_s0 = sadd.s32 4294967295, %s4201_s27   ;;  %s4201_s27 = sphi %s4310_s27, %s5231_s27   ;;  %s4197_s26 = sphi %s4308_s26, %s5230_s26   ;;  %s4193_s25 = sphi %s4306_s25, %s5229_s25   ;;  %s4189_s24 = sphi %s4304_s24, %s5228_s24  }
  0x15   : > { %s468_s29 = sshll.u32 %s4203_s28, 4  ;;  %p2974_p0 = scmp.ge.s32.totalorder %s4201_s27, 1  ;;  %s4331_s29 = int_to_ptr.vmem [resolvable:$true] %s468_s29 }
  0x16   : > { %p5182_p1 = scmp.eq.s32.totalorder %s4325_s0, 0  ;;  %p447_p2 = scmp.lt.s32.totalorder %s4201_s27, 3 }
  0x17   : > { %s4204_s18 = smov [#allocation9]   ;;  %s4205_s20 = smov [#allocation8]  }
  0x18   : > { %p4333_p4 = pnand %p2974_p0, %p447_p2  ;;  %s494_s19 = sshll.u32 %s4204_s18, 4  ;;  %s4345_s19 = int_to_ptr.vmem [resolvable:$true] %s494_s19 }
  0x19   : > { %s481_s21 = sshll.u32 %s4205_s20, 4  ;;  %s5198_s9 = sld [smem:[#allocation27_spill]]  ;;  %s4347_s21 = int_to_ptr.vmem [resolvable:$true] %s481_s21 }
  0x1a   : > { %s5196_s30 = scalar_select %p4333_p4, 1, 0 }
  0x1b   : > { %p3728_p5 = pneg %p4333_p4 }
  0x1d   : > { %p4341_p6 = pnand %p3728_p5, %p5182_p1 }
  0x1f   : > { %s3955_s28 = scalar_lea.hbm %s5198_s9, 1024  ;;  %p4357_p8 = pneg %p4341_p6 }
  0x20   : > { %p3956_p7 = scmp.ne.s32.totalorder %s5198_s9, %s3955_s28  ;;  %p3962_p11 = scmp.lt.u32.totalorder %s3955_s28, %s5198_s9 }
  0x22   : > { %p3958_p9 = pnand %p4357_p8, %p3956_p7 }
  0x24   : > { %p3959_p10 = pneg %p3958_p9 }
  0x26   : > { %p3964_p12 = pnand %p3962_p11, %p3959_p10 }
  0x28   : > { %3967 = shalt.err (!%p3964_p12)
}
  0x29   : > { %s3968_s16 = scalar_lea.vmem %s4331_s29, 1024  ;;  %p3976_p5 = scmp.lt.s32.totalorder %s4331_s29, %s4331_s29 }
  0x2a   : > { %p3969_p13 = scmp.ne.s32.totalorder %s4331_s29, %s3968_s16  ;;  %p3977_p3 = scmp.lt.s32.totalorder %s3968_s16, %s3968_s16 }
  0x2c   : > { %p3971_p0 = pnand %p3969_p13, %p4357_p8  ;;  %p3978_p7 = por %p3977_p3, %p3976_p5 }
  0x2e   : > { %p3972_p2 = pneg %p3971_p0 }
  0x30   : > { %p3979_p9 = pnand %p3978_p7, %p3972_p2 }
  0x32   : > { %3982 = shalt.err (!%p3979_p9)
}
  0x33   : > { %s4206_s17 = smov 64   ;;  %s4207_s14 = smov 4  }
  0x34   : > { %3731 = dma.hbm_to_vmem [thread:$0]  (!%p4341_p6), %s5198_s9, 1024, %s4331_s29, [#allocation7], %s4206_s17, %s4206_s17, %s4207_s14  }
  0x35   : > { %s3983_s16 = scalar_lea.hbm %s5171_s11, 1024 }
  0x36   : > { %p3984_p3 = scmp.ne.s32.totalorder %s5171_s11, %s3983_s16  ;;  %p3990_p12 = scmp.lt.u32.totalorder %s3983_s16, %s5171_s11 }
  0x38   : > { %p3986_p10 = pnand %p3984_p3, %p4357_p8 }
  0x3a   : > { %p3987_p11 = pneg %p3986_p10 }
  0x3c   : > { %p3992_p13 = pnand %p3990_p12, %p3987_p11 }
  0x3e   : > { %3995 = shalt.err (!%p3992_p13)
}
  0x3f   : > { %s3996_s29 = scalar_lea.vmem %s4345_s19, 1024  ;;  %p4004_p7 = scmp.lt.s32.totalorder %s4345_s19, %s4345_s19 }
  0x40   : > { %p3997_p0 = scmp.ne.s32.totalorder %s4345_s19, %s3996_s29  ;;  %p4005_p9 = scmp.lt.s32.totalorder %s3996_s29, %s3996_s29 }
  0x42   : > { %p3999_p2 = pnand %p3997_p0, %p4357_p8  ;;  %p4006_p3 = por %p4005_p9, %p4004_p7 }
  0x44   : > { %p4000_p5 = pneg %p3999_p2 }
  0x46   : > { %p4007_p10 = pnand %p4006_p3, %p4000_p5 }
  0x48   : > { %4010 = shalt.err (!%p4007_p10)
}
  0x49   : > { %3737 = dma.hbm_to_vmem [thread:$0]  (!%p4341_p6), %s5171_s11, 1024, %s4345_s19, [#allocation10], %s4206_s17, %s4206_s17, %s4207_s14  }
  0x4a   : > { %s4011_s22 = scalar_lea.hbm %s5170_s10, 1024 }
  0x4b   : > { %p4012_p11 = scmp.ne.s32.totalorder %s5170_s10, %s4011_s22  ;;  %p4018_p0 = scmp.lt.u32.totalorder %s4011_s22, %s5170_s10 }
  0x4d   : > { %p4014_p12 = pnand %p4012_p11, %p4357_p8 }
  0x4f   : > { %p4015_p13 = pneg %p4014_p12 }
  0x51   : > { %p4020_p2 = pnand %p4018_p0, %p4015_p13 }
  0x53   : > { %4023 = shalt.err (!%p4020_p2)
}
  0x54   : > { %s4024_s19 = scalar_lea.vmem %s4347_s21, 1024  ;;  %p4032_p3 = scmp.lt.s32.totalorder %s4347_s21, %s4347_s21 }
  0x55   : > { %p4025_p5 = scmp.ne.s32.totalorder %s4347_s21, %s4024_s19  ;;  %p4033_p10 = scmp.lt.s32.totalorder %s4024_s19, %s4024_s19 }
  0x57   : > { %p4027_p7 = pnand %p4025_p5, %p4357_p8  ;;  %p4034_p11 = por %p4033_p10, %p4032_p3 }
  0x59   : > { %p4028_p9 = pneg %p4027_p7 }
  0x5b   : > { %p4035_p12 = pnand %p4034_p11, %p4028_p9 }
  0x5d   : > { %4038 = shalt.err (!%p4035_p12)
}
  0x5e   : > { %3734 = dma.hbm_to_vmem [thread:$0]  (!%p4341_p6), %s5170_s10, 1024, %s4347_s21, [#allocation7], %s4206_s17, %s4206_s17, %s4207_s14  }
  0x5f   : > { %s4208_s7 = smov [#allocation11]   ;;  %s4209_s12 = smov [#allocation12]  }
  0x60   : > { %s510_s8 = sshll.u32 %s4208_s7, 4  ;;  %s526_s22 = sshll.u32 %s4209_s12, 4  ;;  %s511_s8 = int_to_ptr.vmem [resolvable:$true] %s510_s8  ;;  %s527_s22 = int_to_ptr.vmem [resolvable:$true] %s526_s22 }
  0x61   : > { %s4039_s20 = scalar_lea.hbm %s5173_s13, 1024 }
  0x62   : > { %p4040_p13 = scmp.ne.s32.totalorder %s5173_s13, %s4039_s20  ;;  %p4046_p5 = scmp.lt.u32.totalorder %s4039_s20, %s5173_s13 }
  0x64   : > { %p4042_p0 = pnand %p4040_p13, %p4357_p8 }
  0x66   : > { %p4043_p2 = pneg %p4042_p0 }
  0x68   : > { %p4048_p7 = pnand %p4046_p5, %p4043_p2 }
  0x6a   : > { %4051 = shalt.err (!%p4048_p7)
}
  0x6b   : > { %s4052_s21 = scalar_lea.vmem %s511_s8, 1024  ;;  %p4060_p11 = scmp.lt.s32.totalorder %s511_s8, %s511_s8 }
  0x6c   : > { %p4053_p9 = scmp.ne.s32.totalorder %s511_s8, %s4052_s21  ;;  %p4061_p12 = scmp.lt.s32.totalorder %s4052_s21, %s4052_s21 }
  0x6e   : > { %p4055_p3 = pnand %p4053_p9, %p4357_p8  ;;  %p4062_p1 = por %p4061_p12, %p4060_p11 }
  0x70   : > { %p4056_p10 = pneg %p4055_p3 }
  0x72   : > { %p4063_p4 = pnand %p4062_p1, %p4056_p10 }
  0x74   : > { %4066 = shalt.err (!%p4063_p4)
}
  0x75   : > { %3740 = dma.hbm_to_vmem [thread:$0]  (!%p4341_p6), %s5173_s13, 1024, %s511_s8, [#allocation10], %s4206_s17, %s4206_s17, %s4207_s14  }
  0x76   : > { %s4067_s23 = scalar_lea.hbm %s5175_s15, 1024 }
  0x77   : > { %p4068_p1 = scmp.ne.s32.totalorder %s5175_s15, %s4067_s23  ;;  %p4074_p0 = scmp.lt.u32.totalorder %s4067_s23, %s5175_s15 }
  0x79   : > { %p4070_p4 = pnand %p4068_p1, %p4357_p8 }
  0x7b   : > { %p4071_p13 = pneg %p4070_p4 }
  0x7d   : > { %p4076_p2 = pnand %p4074_p0, %p4071_p13 }
  0x7f   : > { %4079 = shalt.err (!%p4076_p2)
}
  0x80   : > { %s4080_s29 = scalar_lea.vmem %s527_s22, 1024  ;;  %p4088_p3 = scmp.lt.s32.totalorder %s527_s22, %s527_s22 }
  0x81   : > { %p4081_p5 = scmp.ne.s32.totalorder %s527_s22, %s4080_s29  ;;  %p4089_p10 = scmp.lt.s32.totalorder %s4080_s29, %s4080_s29 }
  0x83   : > { %p4083_p7 = pnand %p4081_p5, %p4357_p8  ;;  %p4090_p11 = por %p4089_p10, %p4088_p3 }
  0x85   : > { %p4084_p9 = pneg %p4083_p7 }
  0x87   : > { %p4091_p12 = pnand %p4090_p11, %p4084_p9 }
  0x89   : > { %4094 = shalt.err (!%p4091_p12)
}
  0x8a   : > { %3743 = dma.hbm_to_vmem [thread:$0]  (!%p4341_p6), %s5175_s15, 1024, %s527_s22, [#allocation13], %s4206_s17, %s4206_s17, %s4207_s14  }
  0x8b   : > { %s4476_s1 = sadd.s32 1, %s4201_s27   ;;  %s83_s9 = sadd.s32 1, %s4197_s26 }
  0x8c   : > { %s80_s18 = ssub.s32 %s4201_s27, %s4476_s1  ;;  %p90_p1 = scmp.ne.s32.totalorder %s4197_s26, %s4193_s25 }
  0x8d   : > { %p81_p8 = scmp.eq.s32.totalorder %s80_s18, 0  ;;  %p91_p4 = scmp.eq.s32.totalorder %s4201_s27, 0 }
  0x8e   : > { %p96_p13 = scmp.ne.s32.totalorder %s4193_s25, %s4189_s24  ;;  %p5200_p2 = scmp.eq.s32.totalorder %s4325_s0, 0 }
  0x8f   : > { %s4487_s6 = scalar_select %p81_p8, %s4197_s26, %s83_s9  }
  0x90   : > { %p92_p0 = por %p91_p4, %p90_p1  ;;  %p4491_p5 = por %p5200_p2, %p96_p13 }
  0x91   : > { %p3753_p7 = scmp.lt.s32.totalorder %s4201_s27, 2  ;;  %s543_s12 = sand.u32 1, %s4197_s26  }
  0x92   : > { %s3699_s22 = smul.u32 192, %s543_s12  ;;  %s5203_s2 = sld [smem:[#allocation22_spill]] }
  0x93   : > { %s3700_s23 = smul.u32 3072, %s4201_s27  ;;  %p4498_p6 = pnand %p3753_p7, %p92_p0 }
  0x94   : > { %s547_s19 = scalar_lea.vmem [#allocation3], %s3699_s22  ;;  %s4509_s27 = scalar_lea.sflag [#allocation4], %s543_s12 }
  0x95   : > { %s554_s29 = sshll.u32 %s547_s19, 4  ;;  %p4097_p3 = pneg %p4498_p6  ;;  %s4507_s29 = int_to_ptr.vmem [resolvable:$true] %s554_s29 }
  0x98   : > { %s4505_s24 = scalar_lea.hbm %s5203_s2, %s3700_s23  ;;  %s4100_s9 = scalar_lea.hbm %s5203_s2, 6144 }
  0x99   : > { %s4095_s8 = scalar_lea.hbm %s4505_s24, 3072  ;;  %p4101_p12 = scmp.lt.u32.totalorder %s4505_s24, %s5203_s2 }
  0x9a   : > { %p4096_p9 = scmp.ne.s32.totalorder %s4505_s24, %s4095_s8  ;;  %p4102_p8 = scmp.lt.u32.totalorder %s4100_s9, %s4095_s8 }
  0x9b   : > { %p4104_p4 = scmp.lt.u32.totalorder %s4095_s8, %s4505_s24 }
  0x9c   : > { %p4098_p10 = pnand %p4097_p3, %p4096_p9  ;;  %p4103_p1 = por %p4102_p8, %p4101_p12 }
  0x9e   : > { %p4099_p11 = pneg %p4098_p10  ;;  %p4105_p13 = por %p4104_p4, %p4103_p1 }
  0xa0   : > { %p4106_p0 = pnand %p4105_p13, %p4099_p11 }
  0xa2   : > { %4109 = shalt.err (!%p4106_p0)
}
  0xa3   : > { %s4110_s12 = scalar_lea.vmem %s4507_s29, 3072  ;;  %s4210_s22 = smov [#allocation3]  }
  0xa4   : > { %p4111_p2 = scmp.ne.s32.totalorder %s4507_s29, %s4110_s12  ;;  %s4115_s16 = sshll.u32 %s4210_s22, 4  ;;  %s4116_s16 = int_to_ptr.vmem [resolvable:$false] %s4115_s16 }
  0xa5   : > { %s4117_s19 = scalar_lea.vmem %s4116_s16, 6144  ;;  %p4118_p10 = scmp.lt.s32.totalorder %s4507_s29, %s4116_s16 }
  0xa6   : > { %p4113_p7 = pnand %p4111_p2, %p4097_p3  ;;  %p4119_p12 = scmp.lt.s32.totalorder %s4117_s19, %s4110_s12 }
  0xa8   : > { %p4114_p9 = pneg %p4113_p7  ;;  %p4120_p8 = por %p4119_p12, %p4118_p10 }
  0xaa   : > { %p4121_p1 = pnand %p4120_p8, %p4114_p9 }
  0xac   : > { %4124 = shalt.err (!%p4121_p1)
}
  0xad   : > { %3747 = dma.hbm_to_vmem [thread:$0]  (!%p4498_p6), %s4505_s24, 3072, %s4507_s29, %s4509_s27, %s4206_s17, %s4206_s17, %s4207_s14  }
  0xae   : > { %p5204_p3 = scmp.ne.s32.totalorder %s5196_s30, 0 }
  0xaf   : > { %s600_s8 = sand.u32 (!%p5204_p3), 1, %s4193_s25  }
  0xb0   : > { %598 = sbr.rel (%p5204_p3) target bundleno = 2669 (0xa6d), region = 88  ;;  %s601_s18 = scalar_lea.sflag (!%p5204_p3), [#allocation4], %s600_s8 }
  0xb1   : > { %s3701_s21 = smul.u32 (!%p5204_p3), 192, %s600_s8 }
  0xb3   : > { %s4543_s9 = scalar_lea.vmem (!%p5204_p3), [#allocation3], %s3701_s21 }
  0xb7   : > { %4168 = dma.done.wait (%p4491_p5), %s601_s18, 3072  }
  0xb8   : > { %4170 = vsyncadd (%p4491_p5), %s601_s18, 4294964224  ;;  %p5205_p11 = scmp.eq.s32.totalorder %s4325_s0, 0 }
  0xba   : > { %4172 = dma.done.wait (%p5205_p11), [#allocation7], 2048   ;;  %p5206_p6 = pmov %p5205_p11 }
  0xbc   : > { %4174 = vsyncadd (%p5206_p6), [#allocation7], 4294965248  ;;  %p5207_p4 = pmov %p5206_p6 }
  0xbe   : > { %4176 = dma.done.wait (%p5207_p4), [#allocation10], 2048   ;;  %p5208_p13 = pmov %p5207_p4 }
  0xbf   : > { %p5209_p0 = pmov %p5207_p4 }
  0xc0   : > { %4178 = vsyncadd (%p5208_p13), [#allocation10], 4294965248 }
  0xc1   : > { %4180 = dma.done.wait (%p5209_p0), [#allocation13], 1024   ;;  %p5210_p2 = pmov %p5209_p0 }
  0xc2   : > { %p687_p5 = scmp.lt.s32.totalorder %s4325_s0, 1  ;;  %s5211_s4 = sld [smem:[#allocation23_spill]] }
  0xc3   : > { %4182 = vsyncadd (%p5210_p2), [#allocation13], 4294966272  ;;  %s5212_s19 = sld [smem:[#allocation24_spill]]  ;;  %s5213_s17 = sld [smem:[#allocation25_spill]] }
  0xc4   : > { %s4563_s30 = scalar_select %p687_p5, %s4325_s0, 1 }
  0xc5   : > { %p5214_p7 = scmp.ne.s32.totalorder %s4325_s0, 0 }
  0xc6   : > { %s3131_s28 = sshll.u32 %s4563_s30, 6  ;;  %s697_s12 = scalar_lea.vmem %s5165_s5, %s4563_s30 }
  0xc7   : > { %708 = sbr.rel (%p5214_p7) target bundleno = 211 (0xd3), region = 116  ;;  %s5215_s24 = sld [smem:[#allocation20_spill]] (!%p5214_p7) }
  0xc8   : > { %s4573_s27 = scalar_lea.vmem %s5211_s4, %s3131_s28 }
  0xc9   : > { %s700_s8 = scalar_lea.vmem %s5212_s19, %s4563_s30  ;;  %s703_s14 = scalar_lea.vmem %s5213_s17, %s4563_s30 }
  0xcd   : > { %s5216_s29 = smov (!%p5214_p7), %s5215_s24  ;;  %v3803_v0 = vld [vmem:[%s5215_s24] sm:$0xff] (!%p5214_p7)  }
  0xce   : > { %v3804_v1 = vld [vmem:[%s5216_s29 + $0x8] sm:$0xff]   ;;  %773 = vst [vmem:[#allocation2] sm:$0xff] %v3803_v0  ;;  %v3805_v2 = vld [vmem:[%s5216_s29 + $0x10] sm:$0xff]   ;;  %v3806_v3 = vld [vmem:[%s5216_s29 + $0x18] sm:$0xff]  }
  0xcf   : > { %774 = vst [vmem:[#allocation2 + $0x8] sm:$0xff] %v3804_v1  ;;  %775 = vst [vmem:[#allocation2 + $0x10] sm:$0xff] %v3805_v2  ;;  %v3807_v4 = vld [vmem:[%s5216_s29 + $0x20] sm:$0xff]   ;;  %v3808_v5 = vld [vmem:[%s5216_s29 + $0x28] sm:$0xff]  }
  0xd0   : > { %776 = vst [vmem:[#allocation2 + $0x18] sm:$0xff] %v3806_v3  ;;  %777 = vst [vmem:[#allocation2 + $0x20] sm:$0xff] %v3807_v4  ;;  %v3809_v6 = vld [vmem:[%s5216_s29 + $0x30] sm:$0xff]   ;;  %v3810_v7 = vld [vmem:[%s5216_s29 + $0x38] sm:$0xff]  }
  0xd1   : > { %778 = vst [vmem:[#allocation2 + $0x28] sm:$0xff] %v3808_v5  ;;  %779 = vst [vmem:[#allocation2 + $0x30] sm:$0xff] %v3809_v6 }
  0xd2   : > { %780 = vst [vmem:[#allocation2 + $0x38] sm:$0xff] %v3810_v7 }
  0xd3 PF: > { %s5217_s20 = sld [smem:[#allocation21_spill]]  ;;  %v3819_v14 = vld [vmem:[%s4543_s9 + $0x40] sm:$0xff]   ;;  %v3820_v15 = vld [vmem:[%s4543_s9 + $0x48] sm:$0xff]   ;;  %v3821_v16 = vld [vmem:[%s4543_s9 + $0x50] sm:$0xff]   ;;  %s5218_s21 = scalar_lea.vmem %s5163_s3, %s4563_s30  ;;  %vm1779_vm0 = vcmask 15360   ;;  %vm1989_vm1 = vcmask 1040384  }
  0xd4   : > { %3332 = vmatprep.subr.bf16.mxu1 %v3819_v14  ;;  %v3822_v18 = vld [vmem:[%s4543_s9 + $0x58] sm:$0xff]   ;;  %v3823_v20 = vld [vmem:[%s4543_s9 + $0x60] sm:$0xff]   ;;  %v3824_v22 = vld [vmem:[%s4543_s9 + $0x68] sm:$0xff]   ;;  %p3082_p9 = scmp.ne.s32.totalorder %s4325_s0, 1 }
  0xd5   : > { %3333 = vmatpush3.bf16.msra.mxu1 %v3819_v14  ;;  %v3825_v25 = vld [vmem:[%s4543_s9 + $0x70] sm:$0xff]   ;;  %v3826_v31 = vld [vmem:[%s4543_s9 + $0x78] sm:$0xff]   ;;  %v3827_v32 = vld [vmem:[%s4543_s9] sm:$0xff]   ;;  %vm4212_vm2 = vmmov (!%p3082_p9), 0   ;;  %s5221_s24 = sld [smem:[#allocation26_spill]] (!%p3082_p9)  ;;  %s5223_s19 = sld [smem:[#allocation28_spill]] (!%p3082_p9) }
  0xd6   : > { %v4615_v9 = vld [vmem:[#allocation2 + $0x8] sm:$0xff]  ;;  %v4623_v11 = vld [vmem:[#allocation2 + $0x10] sm:$0xff]  ;;  %3334 = vmatprep.subr.bf16.mxu1 %v3820_v15  ;;  %v3830_v47 = vld [vmem:[%s4543_s9 + $0x18] sm:$0xff]   ;;  %s5224_s2 = sld [smem:[#allocation29_spill]] (!%p3082_p9)  ;;  %s5225_s4 = sld [smem:[#allocation30_spill]] (!%p3082_p9) }
  0xd7   : > { %v4627_v12 = vld [vmem:[#allocation2 + $0x18] sm:$0xff]  ;;  %v4630_v13 = vld [vmem:[#allocation2 + $0x20] sm:$0xff]  ;;  %v3828_v39 = vld [vmem:[%s4543_s9 + $0x8] sm:$0xff]  }
  0xd8   : > { %v4638_v17 = vld [vmem:[#allocation2 + $0x28] sm:$0xff]  ;;  %v4642_v19 = vld [vmem:[#allocation2 + $0x30] sm:$0xff]  ;;  %v3831_v50 = vld [vmem:[%s4543_s9 + $0x20] sm:$0xff]  }
  0xd9   : > { %v3811_v10 = vld [vmem:[%s5217_s20] sm:$0xff]   ;;  %3335 = vmatpush3.bf16.msra.mxu1 %v3820_v15  ;;  %v4647_v21 = vld [vmem:[#allocation2 + $0x38] sm:$0xff]  ;;  %v4656_v23 = vld [vmem:[%s5217_s20 + $0x8] sm:$0xff]  }
  0xda   : > { %v4613_v8 = vld [vmem:[#allocation2] sm:$0xff]  ;;  %3316 = vmatprep.mubr.bf16.mxu0 %v3811_v10  ;;  %3336 = vmatprep.subr.bf16.mxu1 %v3821_v16  ;;  %v4661_v24 = vld [vmem:[%s5217_s20 + $0x10] sm:$0xff]   ;;  %v4670_v26 = vld [vmem:[%s5217_s20 + $0x18] sm:$0xff]  }
  0xdb   : > { %3300 = vmatprep.subr.bf16.mxu0 %v4613_v8  ;;  %v4675_v27 = vld [vmem:[%s5217_s20 + $0x20] sm:$0xff]   ;;  %v4682_v28 = vld [vmem:[%s5217_s20 + $0x28] sm:$0xff]   ;;  %v4687_v29 = vld [vmem:[%s5217_s20 + $0x30] sm:$0xff]   ;;  %s5222_s28 = smov (!%p3082_p9), %s5221_s24 }
  0xdc   : > { %3301 = vmatpush3.bf16.msra.mxu0 %v4613_v8  ;;  %v4694_v30 = vld [vmem:[%s5217_s20 + $0x38] sm:$0xff]   ;;  %v3829_v42 = vld [vmem:[%s4543_s9 + $0x10] sm:$0xff]   ;;  %v3832_v55 = vld [vmem:[%s4543_s9 + $0x28] sm:$0xff]  }
  0xdd   : > { %3302 = vmatprep.subr.bf16.mxu0 %v4615_v9  ;;  %3337 = vmatpush3.bf16.msra.mxu1 %v3821_v16  ;;  %v3833_v58 = vld [vmem:[%s4543_s9 + $0x30] sm:$0xff]   ;;  %v3834_v63 = vld [vmem:[%s4543_s9 + $0x38] sm:$0xff]   ;;  %v3835_v0 = vld [vmem:[%s4543_s9 + $0x80] sm:$0xff]  }
  0xde   : > { %3338 = vmatprep.subr.bf16.mxu1 %v3822_v18  ;;  %v3836_v1 = vld [vmem:[%s4543_s9 + $0x88] sm:$0xff]   ;;  %v3837_v2 = vld [vmem:[%s4543_s9 + $0x90] sm:$0xff]   ;;  %v3838_v3 = vld [vmem:[%s4543_s9 + $0x98] sm:$0xff]  }
  0xdf   : > { %v3839_v4 = vld [vmem:[%s4543_s9 + $0xa0] sm:$0xff]   ;;  %v3840_v5 = vld [vmem:[%s4543_s9 + $0xa8] sm:$0xff]   ;;  %v3841_v6 = vld [vmem:[%s4543_s9 + $0xb0] sm:$0xff]  }
  0xe0   : > { %3303 = vmatpush3.bf16.msra.mxu0 %v4615_v9  ;;  %v3842_v7 = vld [vmem:[%s4543_s9 + $0xb8] sm:$0xff]  }
  0xe1   : > { %3304 = vmatprep.subr.bf16.mxu0 %v4623_v11  ;;  %3339 = vmatpush3.bf16.msra.mxu1 %v3822_v18 }
  0xe2   : > { %3340 = vmatprep.subr.bf16.mxu1 %v3823_v20 }
  0xe4   : > { %3305 = vmatpush3.bf16.msra.mxu0 %v4623_v11 }
  0xe5   : > { %3306 = vmatprep.subr.bf16.mxu0 %v4627_v12  ;;  %3341 = vmatpush3.bf16.msra.mxu1 %v3823_v20 }
  0xe6   : > { %3342 = vmatprep.subr.bf16.mxu1 %v3824_v22 }
  0xe8   : > { %3307 = vmatpush3.bf16.msra.mxu0 %v4627_v12 }
  0xe9   : > { %3308 = vmatprep.subr.bf16.mxu0 %v4630_v13  ;;  %3343 = vmatpush3.bf16.msra.mxu1 %v3824_v22 }
  0xea   : > { %3344 = vmatprep.subr.bf16.mxu1 %v3825_v25 }
  0xec   : > { %3309 = vmatpush3.bf16.msra.mxu0 %v4630_v13 }
  0xed   : > { %3310 = vmatprep.subr.bf16.mxu0 %v4638_v17  ;;  %3345 = vmatpush3.bf16.msra.mxu1 %v3825_v25 }
  0xee   : > { %3346 = vmatprep.subr.bf16.mxu1 %v3826_v31 }
  0xf0   : > { %3311 = vmatpush3.bf16.msra.mxu0 %v4638_v17 }
  0xf1   : > { %3312 = vmatprep.subr.bf16.mxu0 %v4642_v19  ;;  %3347 = vmatpush3.bf16.msra.mxu1 %v3826_v31 }
  0xf2   : > { %3364 = vmatprep.subr.bf16.mxu1 %v3827_v32 }
  0xf4   : > { %3313 = vmatpush3.bf16.msra.mxu0 %v4642_v19 }
  0xf5   : > { %3314 = vmatprep.subr.bf16.mxu0 %v4647_v21 }
  0xf8   : > { %3315 = vmatpush3.bf16.msra.mxu0 %v4647_v21 }
  0xfb   : > { %3317 = vmatmul.mubr.bf16.vlgmr.msra.gmra.mrb[0].mxu0 %v4656_v23 }
  0xfc   : > { %3320 = vmatprep.mubr.bf16.mxu0 %v4661_v24 }
 0x103   : > { %3321 = vmatmul.mubr.bf16.gmra.mrb[4].mxu0 %v4670_v26 }
 0x104   : > { %3324 = vmatprep.mubr.bf16.mxu0 %v4675_v27 }
 0x10b   : > { %3325 = vmatmul.mubr.bf16.gmra.mrb[8].mxu0 %v4682_v28 }
 0x10c   : > { %3328 = vmatprep.mubr.bf16.mxu0 %v4687_v29 }
 0x113   : > { %3329 = vmatmul.mubr.bf16.gmra.mrb[12].mxu0 %v4694_v30 }
 0x114   : > { %3412 = vmatprep.mubr.bf16.mxu0 %v3811_v10  ;;  %v3845_v10 = vld [vmem:[%s4573_s27 + $0x10] sm:$0xff]  }
 0x1ce   : > { %v3318_v33 = vpop.f32.mrb[0].mxu0 }
 0x1cf   : > { %v903_v34 = vpop.f32.mrb[1].mxu0 }
 0x1d0   : > { %v3319_v35 = vpop.f32.mrb[2].mxu0 }
 0x1d1   : > { %v967_v36 = vpack.c.bf16 %v3319_v35, %v3318_v33  ;;  %v906_v37 = vpop.f32.mrb[3].mxu0 }
 0x1d2   : > { %v966_v38 = vpack.c.bf16 %v906_v37, %v903_v34 }
 0x1d4   : > { %3348 = vmatprep.mubr.bf16.mxu1 %v966_v38  ;;  %3396 = vmatprep.subr.bf16.mxu0 %v966_v38 }
 0x1d5   : > { %3349 = vmatmul.mubr.bf16.vlgmr.msra.gmra.mrb[0].mxu1 %v967_v36  ;;  %3397 = vmatpush3.bf16.msra.mxu0 %v966_v38  ;;  %v3849_v38 = vld [vmem:[%s4573_s27 + $0x30] sm:$0xff]  }
 0x1d6   : > { %v3322_v40 = vpop.f32.mrb[4].mxu0  ;;  %3398 = vmatprep.subr.bf16.mxu0 %v967_v36  ;;  %3365 = vmatpush3.bf16.msra.mxu1 %v3827_v32 }
 0x1d7   : > { %v919_v41 = vpop.f32.mrb[5].mxu0  ;;  %3366 = vmatprep.subr.bf16.mxu1 %v3828_v39 }
 0x1d8   : > { %v3323_v43 = vpop.f32.mrb[6].mxu0 }
 0x1d9   : > { %v969_v44 = vpack.c.bf16 %v3323_v43, %v3322_v40  ;;  %v922_v45 = vpop.f32.mrb[7].mxu0  ;;  %3399 = vmatpush3.bf16.msra.mxu0 %v967_v36  ;;  %v3063_v40 = vld [vmem:[%s5218_s21] ss:$0 sm:$0xff] }
 0x1da   : > { %v968_v46 = vpack.c.bf16 %v922_v45, %v919_v41  ;;  %3367 = vmatpush3.bf16.msra.mxu1 %v3828_v39  ;;  %v3850_v39 = vld [vmem:[%s4573_s27 + $0x38] sm:$0xff]  }
 0x1db   : > { %3368 = vmatprep.subr.bf16.mxu1 %v3829_v42 }
 0x1dc   : > { %3352 = vmatprep.mubr.bf16.mxu1 %v968_v46  ;;  %3400 = vmatprep.subr.bf16.mxu0 %v968_v46 }
 0x1dd   : > { %3353 = vmatmul.mubr.bf16.gmra.mrb[4].mxu1 %v969_v44  ;;  %3401 = vmatpush3.bf16.msra.mxu0 %v968_v46 }
 0x1de   : > { %v3326_v48 = vpop.f32.mrb[8].mxu0  ;;  %3402 = vmatprep.subr.bf16.mxu0 %v969_v44  ;;  %3369 = vmatpush3.bf16.msra.mxu1 %v3829_v42 }
 0x1df   : > { %v935_v49 = vpop.f32.mrb[9].mxu0  ;;  %3370 = vmatprep.subr.bf16.mxu1 %v3830_v47 }
 0x1e0   : > { %v3327_v51 = vpop.f32.mrb[10].mxu0 }
 0x1e1   : > { %v971_v52 = vpack.c.bf16 %v3327_v51, %v3326_v48  ;;  %v938_v53 = vpop.f32.mrb[11].mxu0  ;;  %3403 = vmatpush3.bf16.msra.mxu0 %v969_v44 }
 0x1e2   : > { %v970_v54 = vpack.c.bf16 %v938_v53, %v935_v49  ;;  %3371 = vmatpush3.bf16.msra.mxu1 %v3830_v47 }
 0x1e3   : > { %3372 = vmatprep.subr.bf16.mxu1 %v3831_v50 }
 0x1e4   : > { %3356 = vmatprep.mubr.bf16.mxu1 %v970_v54  ;;  %3404 = vmatprep.subr.bf16.mxu0 %v970_v54 }
 0x1e5   : > { %3357 = vmatmul.mubr.bf16.gmra.mrb[8].mxu1 %v971_v52  ;;  %3405 = vmatpush3.bf16.msra.mxu0 %v970_v54 }
 0x1e6   : > { %v3330_v56 = vpop.f32.mrb[12].mxu0  ;;  %3406 = vmatprep.subr.bf16.mxu0 %v971_v52  ;;  %3373 = vmatpush3.bf16.msra.mxu1 %v3831_v50 }
 0x1e7   : > { %v951_v57 = vpop.f32.mrb[13].mxu0  ;;  %3374 = vmatprep.subr.bf16.mxu1 %v3832_v55 }
 0x1e8   : > { %v3331_v59 = vpop.f32.mrb[14].mxu0 }
 0x1e9   : > { %v973_v60 = vpack.c.bf16 %v3331_v59, %v3330_v56  ;;  %v954_v61 = vpop.f32.mrb[15].mxu0  ;;  %3407 = vmatpush3.bf16.msra.mxu0 %v971_v52 }
 0x1ea   : > { %v972_v62 = vpack.c.bf16 %v954_v61, %v951_v57  ;;  %3375 = vmatpush3.bf16.msra.mxu1 %v3832_v55 }
 0x1eb   : > { %3376 = vmatprep.subr.bf16.mxu1 %v3833_v58 }
 0x1ec   : > { %3360 = vmatprep.mubr.bf16.mxu1 %v972_v62  ;;  %3408 = vmatprep.subr.bf16.mxu0 %v972_v62 }
 0x1ed   : > { %3361 = vmatmul.mubr.bf16.gmra.mrb[12].mxu1 %v973_v60  ;;  %3409 = vmatpush3.bf16.msra.mxu0 %v972_v62 }
 0x1ee   : > { %3410 = vmatprep.subr.bf16.mxu0 %v973_v60  ;;  %3377 = vmatpush3.bf16.msra.mxu1 %v3833_v58 }
 0x1ef   : > { %3378 = vmatprep.subr.bf16.mxu1 %v3834_v63  ;;  %3380 = vmatprep.mubr.bf16.mxu1 %v4613_v8  ;;  %v3843_v8 = vld [vmem:[%s4573_s27] sm:$0xff]  }
 0x1f1   : > { %3411 = vmatpush3.bf16.msra.mxu0 %v973_v60 }
 0x1f2   : > { %3379 = vmatpush3.bf16.msra.mxu1 %v3834_v63  ;;  %3460 = vmatprep.subr.bf16.mxu0 %v3843_v8 }
 0x1f3   : > { %3428 = vmatprep.subr.bf16.mxu1 %v3835_v0 }
 0x1f4   : > { %3413 = vmatmul.mubr.bf16.vlgmr.msra.gmra.mrb[16].mxu0 %v4656_v23 }
 0x1f5   : > { %3416 = vmatprep.mubr.bf16.mxu0 %v4661_v24  ;;  %3381 = vmatmul.mubr.bf16.vlgmr.msra.gmra.mrb[0].mxu1 %v4615_v9  ;;  %v3844_v9 = vld [vmem:[%s4573_s27 + $0x8] sm:$0xff]  }
 0x1f6   : > { %3429 = vmatpush3.bf16.msra.mxu1 %v3835_v0  ;;  %3384 = vmatprep.mubr.bf16.mxu1 %v4623_v11  ;;  %v3846_v11 = vld [vmem:[%s4573_s27 + $0x18] sm:$0xff]  }
 0x1f7   : > { %3430 = vmatprep.subr.bf16.mxu1 %v3836_v1  ;;  %3461 = vmatpush3.bf16.msra.mxu0 %v3843_v8 }
 0x1f8   : > { %3462 = vmatprep.subr.bf16.mxu0 %v3844_v9 }
 0x1fa   : > { %3431 = vmatpush3.bf16.msra.mxu1 %v3836_v1 }
 0x1fb   : > { %3432 = vmatprep.subr.bf16.mxu1 %v3837_v2  ;;  %3463 = vmatpush3.bf16.msra.mxu0 %v3844_v9 }
 0x1fc   : > { %3417 = vmatmul.mubr.bf16.gmra.mrb[20].mxu0 %v4670_v26  ;;  %3464 = vmatprep.subr.bf16.mxu0 %v3845_v10 }
 0x1fd   : > { %3420 = vmatprep.mubr.bf16.mxu0 %v4675_v27  ;;  %3385 = vmatmul.mubr.bf16.gmra.mrb[4].mxu1 %v4627_v12  ;;  %v3847_v12 = vld [vmem:[%s4573_s27 + $0x20] sm:$0xff]  }
 0x1fe   : > { %3433 = vmatpush3.bf16.msra.mxu1 %v3837_v2  ;;  %3388 = vmatprep.mubr.bf16.mxu1 %v4630_v13  ;;  %v3848_v13 = vld [vmem:[%s4573_s27 + $0x28] sm:$0xff]  }
 0x1ff   : > { %3434 = vmatprep.subr.bf16.mxu1 %v3838_v3  ;;  %3465 = vmatpush3.bf16.msra.mxu0 %v3845_v10 }
 0x200   : > { %3466 = vmatprep.subr.bf16.mxu0 %v3846_v11 }
 0x202   : > { %3435 = vmatpush3.bf16.msra.mxu1 %v3838_v3 }
 0x203   : > { %3436 = vmatprep.subr.bf16.mxu1 %v3839_v4  ;;  %3467 = vmatpush3.bf16.msra.mxu0 %v3846_v11 }
 0x204   : > { %3421 = vmatmul.mubr.bf16.gmra.mrb[24].mxu0 %v4682_v28  ;;  %3468 = vmatprep.subr.bf16.mxu0 %v3847_v12 }
 0x205   : > { %3424 = vmatprep.mubr.bf16.mxu0 %v4687_v29  ;;  %3389 = vmatmul.mubr.bf16.gmra.mrb[8].mxu1 %v4638_v17 }
 0x206   : > { %3437 = vmatpush3.bf16.msra.mxu1 %v3839_v4  ;;  %3392 = vmatprep.mubr.bf16.mxu1 %v4642_v19 }
 0x207   : > { %3438 = vmatprep.subr.bf16.mxu1 %v3840_v5  ;;  %3469 = vmatpush3.bf16.msra.mxu0 %v3847_v12 }
 0x208   : > { %3470 = vmatprep.subr.bf16.mxu0 %v3848_v13 }
 0x20a   : > { %3439 = vmatpush3.bf16.msra.mxu1 %v3840_v5 }
 0x20b   : > { %3440 = vmatprep.subr.bf16.mxu1 %v3841_v6  ;;  %3471 = vmatpush3.bf16.msra.mxu0 %v3848_v13 }
 0x20c   : > { %3425 = vmatmul.mubr.bf16.gmra.mrb[28].mxu0 %v4694_v30  ;;  %3472 = vmatprep.subr.bf16.mxu0 %v3849_v38 }
 0x20d   : > { %3393 = vmatmul.mubr.bf16.gmra.mrb[12].mxu1 %v4647_v21 }
 0x20e   : > { %3441 = vmatpush3.bf16.msra.mxu1 %v3841_v6 }
 0x20f   : > { %3442 = vmatprep.subr.bf16.mxu1 %v3842_v7  ;;  %3473 = vmatpush3.bf16.msra.mxu0 %v3849_v38 }
 0x210   : > { %3474 = vmatprep.subr.bf16.mxu0 %v3850_v39 }
 0x212   : > { %3443 = vmatpush3.bf16.msra.mxu1 %v3842_v7 }
 0x213   : > { %3650 = vmatprep.subr.bf16.mxu1 %v3843_v8  ;;  %3475 = vmatpush3.bf16.msra.mxu0 %v3850_v39 }
 0x2c7   : > { %v3414_v14 = vpop.f32.mrb[16].mxu0 }
 0x2c8   : > { %v1315_v15 = vpop.f32.mrb[17].mxu0 }
 0x2c9   : > { %v3415_v16 = vpop.f32.mrb[18].mxu0 }
 0x2ca   : > { %v1379_v17 = vpack.c.bf16 %v3415_v16, %v3414_v14  ;;  %v1318_v18 = vpop.f32.mrb[19].mxu0 }
 0x2cb   : > { %v1378_v19 = vpack.c.bf16 %v1318_v18, %v1315_v15 }
 0x2cd   : > { %3444 = vmatprep.mubr.bf16.mxu1 %v1378_v19 }
 0x2ce   : > { %3445 = vmatmul.mubr.bf16.vlgmr.msra.gmra.mrb[0].mxu1 %v1379_v17 }
 0x2cf   : > { %v3418_v20 = vpop.f32.mrb[20].mxu0  ;;  %3658 = vmatpush3.bf16.msra.mxu1 %v3843_v8 }
 0x2d0   : > { %v1331_v21 = vpop.f32.mrb[21].mxu0  ;;  %3651 = vmatprep.subr.bf16.mxu1 %v3844_v9 }
 0x2d1   : > { %v3419_v22 = vpop.f32.mrb[22].mxu0 }
 0x2d2   : > { %v1381_v23 = vpack.c.bf16 %v3419_v22, %v3418_v20  ;;  %v1334_v24 = vpop.f32.mrb[23].mxu0 }
 0x2d3   : > { %v1380_v25 = vpack.c.bf16 %v1334_v24, %v1331_v21  ;;  %3659 = vmatpush3.bf16.msra.mxu1 %v3844_v9 }
 0x2d4   : > { %3652 = vmatprep.subr.bf16.mxu1 %v3845_v10 }
 0x2d5   : > { %3448 = vmatprep.mubr.bf16.mxu1 %v1380_v25 }
 0x2d6   : > { %3449 = vmatmul.mubr.bf16.gmra.mrb[4].mxu1 %v1381_v23 }
 0x2d7   : > { %v3422_v26 = vpop.f32.mrb[24].mxu0  ;;  %3660 = vmatpush3.bf16.msra.mxu1 %v3845_v10 }
 0x2d8   : > { %v1347_v27 = vpop.f32.mrb[25].mxu0  ;;  %3653 = vmatprep.subr.bf16.mxu1 %v3846_v11 }
 0x2d9   : > { %v3423_v28 = vpop.f32.mrb[26].mxu0 }
 0x2da   : > { %v1383_v29 = vpack.c.bf16 %v3423_v28, %v3422_v26  ;;  %v1350_v30 = vpop.f32.mrb[27].mxu0 }
 0x2db   : > { %v1382_v31 = vpack.c.bf16 %v1350_v30, %v1347_v27  ;;  %3661 = vmatpush3.bf16.msra.mxu1 %v3846_v11 }
 0x2dc   : > { %3654 = vmatprep.subr.bf16.mxu1 %v3847_v12 }
 0x2dd   : > { %3452 = vmatprep.mubr.bf16.mxu1 %v1382_v31 }
 0x2de   : > { %3453 = vmatmul.mubr.bf16.gmra.mrb[8].mxu1 %v1383_v29 }
 0x2df   : > { %v3426_v32 = vpop.f32.mrb[28].mxu0  ;;  %3662 = vmatpush3.bf16.msra.mxu1 %v3847_v12 }
 0x2e0   : > { %v1363_v33 = vpop.f32.mrb[29].mxu0  ;;  %3655 = vmatprep.subr.bf16.mxu1 %v3848_v13 }
 0x2e1   : > { %v3427_v34 = vpop.f32.mrb[30].mxu0 }
 0x2e2   : > { %v1385_v35 = vpack.c.bf16 %v3427_v34, %v3426_v32  ;;  %v1366_v36 = vpop.f32.mrb[31].mxu0 }
 0x2e3   : > { %v1384_v37 = vpack.c.bf16 %v1366_v36, %v1363_v33  ;;  %3663 = vmatpush3.bf16.msra.mxu1 %v3848_v13  ;;  %v3064_v33 = vld [vmem:[%s697_s12] ss:$0 sm:$0xff] }
 0x2e4   : > { %3656 = vmatprep.subr.bf16.mxu1 %v3849_v38 }
 0x2e5   : > { %3456 = vmatprep.mubr.bf16.mxu1 %v1384_v37 }
 0x2e6   : > { %3457 = vmatmul.mubr.bf16.gmra.mrb[12].mxu1 %v1385_v35 }
 0x2e7   : > { %3664 = vmatpush3.bf16.msra.mxu1 %v3849_v38 }
 0x2e8   : > { %3657 = vmatprep.subr.bf16.mxu1 %v3850_v39 }
 0x2eb   : > { %3665 = vmatpush3.bf16.msra.mxu1 %v3850_v39 }
 0x3a1   : > { %v3446_v41 = vpop.f32.mrb[0].mxu1 }
 0x3a2   : > { %v1485_v42 = vpop.f32.mrb[1].mxu1  ;;  %v1573_v45 = vadd.f32 %v3446_v41, %v3063_v40 }
 0x3a3   : > { %v1571_v43 = vadd.f32 %v3063_v40, %v1485_v42  ;;  %v3447_v44 = vpop.f32.mrb[2].mxu1 }
 0x3a4   : > { %v1574_v46 = vadd.f32 %v3447_v44, %v3063_v40  ;;  %v1488_v47 = vpop.f32.mrb[3].mxu1  ;;  %v4748_v52 = vmax.f32 %v1573_v45, 0.0 }
 0x3a5   : > { %v1572_v48 = vadd.f32 %v3063_v40, %v1488_v47  ;;  %v4744_v50 = vmax.f32 %v1571_v43, 0.0 }
 0x3a6   : > { %v4742_v49 = vmax.f32 %v1574_v46, 0.0 }
 0x3a7   : > { %v4746_v51 = vmax.f32 %v1572_v48, 0.0 }
 0x3a8   : > { %v1604_v55 = vpack.c.bf16 %v4742_v49, %v4748_v52 }
 0x3a9   : > { %v3450_v53 = vpop.f32.mrb[4].mxu1  ;;  %v1603_v54 = vpack.c.bf16 %v4746_v51, %v4744_v50 }
 0x3aa   : > { %v1501_v56 = vpop.f32.mrb[5].mxu1  ;;  %v1577_v59 = vadd.f32 %v3450_v53, %v3063_v40 }
 0x3ab   : > { %v1575_v57 = vadd.f32 %v3063_v40, %v1501_v56  ;;  %v3451_v58 = vpop.f32.mrb[6].mxu1  ;;  %3476 = vmatprep.mubr.bf16.mxu0 %v1603_v54 }
 0x3ac   : > { %v1578_v60 = vadd.f32 %v3451_v58, %v3063_v40  ;;  %v1504_v61 = vpop.f32.mrb[7].mxu1  ;;  %3477 = vmatmul.mubr.bf16.vlgmr.msra.gmra.mrb[32].mxu0 %v1604_v55  ;;  %v4760_v2 = vmax.f32 %v1577_v59, 0.0 }
 0x3ad   : > { %v1576_v62 = vadd.f32 %v3063_v40, %v1504_v61  ;;  %v4756_v0 = vmax.f32 %v1575_v57, 0.0 }
 0x3ae   : > { %v4754_v63 = vmax.f32 %v1578_v60, 0.0 }
 0x3af   : > { %v4758_v1 = vmax.f32 %v1576_v62, 0.0 }
 0x3b0   : > { %v1606_v6 = vpack.c.bf16 %v4754_v63, %v4760_v2 }
 0x3b1   : > { %v3454_v3 = vpop.f32.mrb[8].mxu1  ;;  %v1605_v4 = vpack.c.bf16 %v4758_v1, %v4756_v0 }
 0x3b2   : > { %v1517_v5 = vpop.f32.mrb[9].mxu1  ;;  %v1581_v9 = vadd.f32 %v3454_v3, %v3063_v40 }
 0x3b3   : > { %v1579_v7 = vadd.f32 %v3063_v40, %v1517_v5  ;;  %v3455_v8 = vpop.f32.mrb[10].mxu1  ;;  %3480 = vmatprep.mubr.bf16.mxu0 %v1605_v4 }
 0x3b4   : > { %v1582_v10 = vadd.f32 %v3455_v8, %v3063_v40  ;;  %v1520_v11 = vpop.f32.mrb[11].mxu1  ;;  %3481 = vmatmul.mubr.bf16.gmra.mrb[36].mxu0 %v1606_v6  ;;  %v4772_v16 = vmax.f32 %v1581_v9, 0.0 }
 0x3b5   : > { %v1580_v12 = vadd.f32 %v3063_v40, %v1520_v11  ;;  %v4768_v14 = vmax.f32 %v1579_v7, 0.0 }
 0x3b6   : > { %v4766_v13 = vmax.f32 %v1582_v10, 0.0 }
 0x3b7   : > { %v4770_v15 = vmax.f32 %v1580_v12, 0.0 }
 0x3b8   : > { %v1608_v19 = vpack.c.bf16 %v4766_v13, %v4772_v16 }
 0x3b9   : > { %v3458_v17 = vpop.f32.mrb[12].mxu1  ;;  %v1607_v18 = vpack.c.bf16 %v4770_v15, %v4768_v14 }
 0x3ba   : > { %v1533_v20 = vpop.f32.mrb[13].mxu1  ;;  %v1585_v23 = vadd.f32 %v3458_v17, %v3063_v40 }
 0x3bb   : > { %v1583_v21 = vadd.f32 %v3063_v40, %v1533_v20  ;;  %v3459_v22 = vpop.f32.mrb[14].mxu1  ;;  %3484 = vmatprep.mubr.bf16.mxu1 %v1607_v18 }
 0x3bc   : > { %v1586_v24 = vadd.f32 %v3459_v22, %v3063_v40  ;;  %v1536_v25 = vpop.f32.mrb[15].mxu1  ;;  %3485 = vmatmul.mubr.bf16.vlgmr.msra.gmra.mrb[16].mxu1 %v1608_v19  ;;  %v4784_v30 = vmax.f32 %v1585_v23, 0.0 }
 0x3bd   : > { %v1584_v26 = vadd.f32 %v3063_v40, %v1536_v25  ;;  %v4780_v28 = vmax.f32 %v1583_v21, 0.0 }
 0x3be   : > { %v4778_v27 = vmax.f32 %v1586_v24, 0.0 }
 0x3bf   : > { %v4782_v29 = vmax.f32 %v1584_v26, 0.0 }
 0x3c0   : > { %v1610_v32 = vpack.c.bf16 %v4778_v27, %v4784_v30 }
 0x3c1   : > { %v1609_v31 = vpack.c.bf16 %v4782_v29, %v4780_v28 }
 0x3c3   : > { %3488 = vmatprep.mubr.bf16.mxu1 %v1609_v31 }
 0x3c4   : > { %3489 = vmatmul.mubr.bf16.gmra.mrb[20].mxu1 %v1610_v32 }
 0x47f   : > { %v3478_v34 = vpop.f32.mrb[32].mxu0 }
 0x480   : > { %v4795_v35 = vadd.f32 %v3478_v34, %v3064_v33  ;;  %v1716_v36 = vpop.f32.mrb[33].mxu0 }
 0x481   : > { %v4797_v37 = vadd.f32 %v3064_v33, %v1716_v36  ;;  %v3479_v38 = vpop.f32.mrb[34].mxu0 }
 0x482   : > { %v4799_v39 = vadd.f32 %v3479_v38, %v3064_v33  ;;  %v1719_v40 = vpop.f32.mrb[35].mxu0  ;;  %v1786_v41 = vsel %vm1779_vm0, %v4795_v35, -inf }
 0x483   : > { %v4803_v42 = vadd.f32 %v3064_v33, %v1719_v40  ;;  %1787 = vmax.xlane.f32.xlu1 %v1786_v41  ;;  %v1780_v43 = vsel %vm1779_vm0, %v4797_v37, -inf }
 0x484   : > { %1781 = vmax.xlane.f32.xlu0 %v1780_v43  ;;  %v1789_v44 = vsel %vm1779_vm0, %v4799_v39, -inf }
 0x485   : > { %v1783_v46 = vsel %vm1779_vm0, %v4803_v42, -inf }
 0x487   : > { %1790 = vmax.xlane.f32.xlu1 %v1789_v44  ;;  %v3482_v45 = vpop.f32.mrb[36].mxu0 }
 0x488   : > { %1784 = vmax.xlane.f32.xlu0 %v1783_v46  ;;  %v1732_v47 = vpop.f32.mrb[37].mxu0  ;;  %v4813_v55 = vadd.f32 %v3482_v45, %v3064_v33 }
 0x489   : > { %v4811_v48 = vadd.f32 %v3064_v33, %v1732_v47  ;;  %v3483_v53 = vpop.f32.mrb[38].mxu0 }
 0x48a   : > { %v1735_v54 = vpop.f32.mrb[39].mxu0  ;;  %v4819_v58 = vadd.f32 %v3483_v53, %v3064_v33  ;;  %v1798_v61 = vsel %vm1779_vm0, %v4813_v55, -inf }
 0x48b   : > { %v4815_v56 = vadd.f32 %v3064_v33, %v1735_v54  ;;  %v1792_v57 = vsel %vm1779_vm0, %v4811_v48, -inf }
 0x48c   : > { %1793 = vmax.xlane.f32.xlu0 %v1792_v57  ;;  %v1801_v5 = vsel %vm1779_vm0, %v4819_v58, -inf }
 0x48d   : > { %v1795_v59 = vsel %vm1779_vm0, %v4815_v56, -inf }
 0x48e   : > { %1796 = vmax.xlane.f32.xlu1 %v1795_v59 }
 0x48f   : > { %v3486_v60 = vpop.f32.mrb[16].mxu1 }
 0x490   : > { %1799 = vmax.xlane.f32.xlu0 %v1798_v61  ;;  %v1748_v62 = vpop.f32.mrb[17].mxu1  ;;  %v4829_v7 = vadd.f32 %v3486_v60, %v3064_v33 }
 0x491   : > { %v4825_v3 = vadd.f32 %v3064_v33, %v1748_v62  ;;  %v3487_v4 = vpop.f32.mrb[18].mxu1 }
 0x492   : > { %1802 = vmax.xlane.f32.xlu1 %v1801_v5  ;;  %v1751_v6 = vpop.f32.mrb[19].mxu1  ;;  %v4835_v10 = vadd.f32 %v3487_v4, %v3064_v33  ;;  %v1810_v17 = vsel %vm1779_vm0, %v4829_v7, -inf }
 0x493   : > { %v4831_v8 = vadd.f32 %v3064_v33, %v1751_v6  ;;  %v1804_v9 = vsel %vm1779_vm0, %v4825_v3, -inf }
 0x494   : > { %1805 = vmax.xlane.f32.xlu0 %v1804_v9  ;;  %v1813_v21 = vsel %vm1779_vm0, %v4835_v10, -inf }
 0x495   : > { %v1807_v11 = vsel %vm1779_vm0, %v4831_v8, -inf }
 0x496   : > { %1808 = vmax.xlane.f32.xlu1 %v1807_v11 }
 0x497   : > { %v3490_v12 = vpop.f32.mrb[20].mxu1 }
 0x498   : > { %1811 = vmax.xlane.f32.xlu0 %v1810_v17  ;;  %v1764_v18 = vpop.f32.mrb[21].mxu1  ;;  %v4845_v23 = vadd.f32 %v3490_v12, %v3064_v33 }
 0x499   : > { %v4841_v19 = vadd.f32 %v3064_v33, %v1764_v18  ;;  %v3491_v20 = vpop.f32.mrb[22].mxu1 }
 0x49a   : > { %1814 = vmax.xlane.f32.xlu1 %v1813_v21  ;;  %v1767_v22 = vpop.f32.mrb[23].mxu1  ;;  %v4851_v26 = vadd.f32 %v3491_v20, %v3064_v33  ;;  %v1822_v32 = vsel %vm1779_vm0, %v4845_v23, -inf }
 0x49b   : > { %v4847_v24 = vadd.f32 %v3064_v33, %v1767_v22  ;;  %v1816_v25 = vsel %vm1779_vm0, %v4841_v19, -inf }
 0x49c   : > { %1817 = vmax.xlane.f32.xlu0 %v1816_v25  ;;  %v1825_v34 = vsel %vm1779_vm0, %v4851_v26, -inf }
 0x49d   : > { %v1819_v31 = vsel %vm1779_vm0, %v4847_v24, -inf }
 0x49e   : > { %1820 = vmax.xlane.f32.xlu1 %v1819_v31 }
 0x4a0   : > { %1823 = vmax.xlane.f32.xlu0 %v1822_v32 }
 0x4a2   : > { %1826 = vmax.xlane.f32.xlu1 %v1825_v34 }
 0x510   : > { %v1788_v36 = vpop.xlane.xlu1 %1787 }
 0x511   : > { %v1830_v38 = vsub.f32 %v4795_v35, %v1788_v36  ;;  %v1782_v40 = vpop.xlane.xlu0 %1781 }
 0x512   : > { %v1828_v41 = vsub.f32 %v4797_v37, %v1782_v40 }
 0x513   : > { %v1848_v33 = vmul.f32 1.442695, %v1830_v38 }
 0x514   : > { %v1844_v43 = vmul.f32 1.442695, %v1828_v41  ;;  %v1791_v44 = vpop.xlane.xlu1 %1790 }
 0x515   : > { %v1831_v45 = vsub.f32 %v4799_v39, %v1791_v44  ;;  %v1785_v46 = vpop.xlane.xlu0 %1784 }
 0x516   : > { %3851 = vpow2.f32 %v1844_v43  ;;  %v1829_v47 = vsub.f32 %v4803_v42, %v1785_v46 }
 0x517   : > { %3853 = vpow2.f32 %v1848_v33  ;;  %v1850_v53 = vmul.f32 1.442695, %v1831_v45 }
 0x518   : > { %v1846_v54 = vmul.f32 1.442695, %v1829_v47 }
 0x519   : > { %v1794_v57 = vpop.xlane.xlu0 %1793 }
 0x51a   : > { %3855 = vpow2.f32 %v1846_v54  ;;  %v1832_v59 = vsub.f32 %v4811_v48, %v1794_v57 }
 0x51b   : > { %v1797_v35 = vpop.xlane.xlu1 %1796  ;;  %3857 = vpow2.f32 %v1850_v53 }
 0x51c   : > { %v1852_v60 = vmul.f32 1.442695, %v1832_v59  ;;  %v1833_v37 = vsub.f32 %v4815_v56, %v1797_v35 }
 0x51d   : > { %v1800_v61 = vpop.xlane.xlu0 %1799 }
 0x51e   : > { %3859 = vpow2.f32 %v1852_v60  ;;  %v1854_v62 = vmul.f32 1.442695, %v1833_v37  ;;  %v1834_v39 = vsub.f32 %v4813_v55, %v1800_v61 }
 0x51f   : > { %v1803_v4 = vpop.xlane.xlu1 %1802 }
 0x520   : > { %v4866_v5 = vpop.eup %3851  ;;  %3861 = vpow2.f32 %v1854_v62  ;;  %v1856_v42 = vmul.f32 1.442695, %v1834_v39  ;;  %v1835_v6 = vsub.f32 %v4819_v58, %v1803_v4 }
 0x521   : > { %v1806_v9 = vpop.xlane.xlu0 %1805  ;;  %v1876_v48 = vsel %vm1779_vm0, %v4866_v5, 0.0  ;;  %v4871_v11 = vpop.eup %3853 }
 0x522   : > { %3863 = vpow2.f32 %v1856_v42  ;;  %v1858_v56 = vmul.f32 1.442695, %v1835_v6  ;;  %v1836_v12 = vsub.f32 %v4825_v3, %v1806_v9  ;;  %1877 = vadd.xlane.f32.xlu0 %v1876_v48  ;;  %v1882_v22 = vsel %vm1779_vm0, %v4871_v11, 0.0 }
 0x523   : > { %v1809_v17 = vpop.xlane.xlu1 %1808 }
 0x524   : > { %v4874_v55 = vpop.eup %3855  ;;  %3865 = vpow2.f32 %v1858_v56  ;;  %v1860_v18 = vmul.f32 1.442695, %v1836_v12  ;;  %v1837_v20 = vsub.f32 %v4831_v8, %v1809_v17 }
 0x525   : > { %v1812_v21 = vpop.xlane.xlu0 %1811  ;;  %v1879_v58 = vsel %vm1779_vm0, %v4874_v55, 0.0  ;;  %v4881_v25 = vpop.eup %3857 }
 0x526   : > { %3867 = vpow2.f32 %v1860_v18  ;;  %v1862_v31 = vmul.f32 1.442695, %v1837_v20  ;;  %v1838_v3 = vsub.f32 %v4829_v7, %v1812_v21  ;;  %1880 = vadd.xlane.f32.xlu1 %v1879_v58  ;;  %1883 = vadd.xlane.f32.xlu0 %v1882_v22  ;;  %v1885_v40 = vsel %vm1779_vm0, %v4881_v25, 0.0  ;;  %v1964_v58 = vld [vmem:[%s700_s8] sm:$0x1] }
 0x527   : > { %v1815_v32 = vpop.xlane.xlu1 %1814  ;;  %3698 = vmatprep.subr.msk.bf16.mxu0 %vm1989_vm1, %v1964_v58 }
 0x528   : > { %v4884_v34 = vpop.eup %3859  ;;  %3869 = vpow2.f32 %v1862_v31  ;;  %v1864_v8 = vmul.f32 1.442695, %v1838_v3  ;;  %v1839_v36 = vsub.f32 %v4835_v10, %v1815_v32  ;;  %v1991_v31 = vsel %vm1989_vm1, %v1964_v58, 0 }
 0x529   : > { %v1818_v38 = vpop.xlane.xlu0 %1817  ;;  %v1888_v41 = vsel %vm1779_vm0, %v4884_v34, 0.0  ;;  %3493 = vmatpush3.bf16.msra.mxu0 %v1991_v31 }
 0x52a   : > { %v4891_v33 = vpop.eup %3861  ;;  %3871 = vpow2.f32 %v1864_v8  ;;  %v1866_v7 = vmul.f32 1.442695, %v1839_v36  ;;  %v1840_v43 = vsub.f32 %v4841_v19, %v1818_v38  ;;  %1886 = vadd.xlane.f32.xlu1 %v1885_v40  ;;  %1889 = vadd.xlane.f32.xlu0 %v1888_v41 }
 0x52b   : > { %v1821_v44 = vpop.xlane.xlu1 %1820  ;;  %v1891_v53 = vsel %vm1779_vm0, %v4891_v33, 0.0 }
 0x52c   : > { %v4894_v45 = vpop.eup %3863  ;;  %3873 = vpow2.f32 %v1866_v7  ;;  %v1868_v10 = vmul.f32 1.442695, %v1840_v43  ;;  %v1841_v46 = vsub.f32 %v4847_v24, %v1821_v44 }
 0x52d   : > { %v1824_v47 = vpop.xlane.xlu0 %1823  ;;  %v1894_v54 = vsel %vm1779_vm0, %v4894_v45, 0.0 }
 0x52e   : > { %v4901_v57 = vpop.eup %3865  ;;  %3875 = vpow2.f32 %v1868_v10  ;;  %v1870_v19 = vmul.f32 1.442695, %v1841_v46  ;;  %v1842_v59 = vsub.f32 %v4845_v23, %v1824_v47  ;;  %1892 = vadd.xlane.f32.xlu1 %v1891_v53  ;;  %1895 = vadd.xlane.f32.xlu0 %v1894_v54 }
 0x52f   : > { %v1827_v35 = vpop.xlane.xlu1 %1826  ;;  %v1897_v61 = vsel %vm1779_vm0, %v4901_v57, 0.0 }
 0x530   : > { %v4904_v60 = vpop.eup %3867  ;;  %3877 = vpow2.f32 %v1870_v19  ;;  %v1872_v24 = vmul.f32 1.442695, %v1842_v59  ;;  %v1843_v37 = vsub.f32 %v4851_v26, %v1827_v35 }
 0x531   : > { %v1900_v62 = vsel %vm1779_vm0, %v4904_v60, 0.0 }
 0x532   : > { %v4911_v39 = vpop.eup %3869  ;;  %3879 = vpow2.f32 %v1872_v24  ;;  %v1874_v4 = vmul.f32 1.442695, %v1843_v37  ;;  %1898 = vadd.xlane.f32.xlu1 %v1897_v61  ;;  %1901 = vadd.xlane.f32.xlu0 %v1900_v62 }
 0x533   : > { %v1903_v42 = vsel %vm1779_vm0, %v4911_v39, 0.0 }
 0x534   : > { %v4913_v23 = vpop.eup %3871  ;;  %3881 = vpow2.f32 %v1874_v4 }
 0x535   : > { %v1906_v26 = vsel %vm1779_vm0, %v4913_v23, 0.0 }
 0x536   : > { %v4919_v6 = vpop.eup %3873  ;;  %1904 = vadd.xlane.f32.xlu1 %v1903_v42  ;;  %1907 = vadd.xlane.f32.xlu0 %v1906_v26 }
 0x537   : > { %v1909_v48 = vsel %vm1779_vm0, %v4919_v6, 0.0 }
 0x538   : > { %v4921_v9 = vpop.eup %3875 }
 0x539   : > { %v1912_v56 = vsel %vm1779_vm0, %v4921_v9, 0.0 }
 0x53a   : > { %v4927_v12 = vpop.eup %3877  ;;  %1910 = vadd.xlane.f32.xlu1 %v1909_v48  ;;  %1913 = vadd.xlane.f32.xlu0 %v1912_v56 }
 0x53b   : > { %v1915_v18 = vsel %vm1779_vm0, %v4927_v12, 0.0 }
 0x53c   : > { %v4929_v17 = vpop.eup %3879 }
 0x53d   : > { %v1918_v20 = vsel %vm1779_vm0, %v4929_v17, 0.0 }
 0x53e   : > { %v4935_v21 = vpop.eup %3881  ;;  %1916 = vadd.xlane.f32.xlu1 %v1915_v18  ;;  %1919 = vadd.xlane.f32.xlu0 %v1918_v20 }
 0x53f   : > { %v1921_v22 = vsel %vm1779_vm0, %v4935_v21, 0.0 }
 0x542   : > { %1922 = vadd.xlane.f32.xlu1 %v1921_v22 }
 0x5af   : > { %v1878_v3 = vpop.xlane.xlu0 %1877 }
 0x5b0   : > { %3883 = vrcp.f32 %v1878_v3 }
 0x5b3   : > { %v1881_v32 = vpop.xlane.xlu1 %1880  ;;  %v1884_v8 = vpop.xlane.xlu0 %1883 }
 0x5b4   : > { %3885 = vrcp.f32 %v1881_v32 }
 0x5b5   : > { %3887 = vrcp.f32 %v1884_v8 }
 0x5b7   : > { %v1887_v36 = vpop.xlane.xlu1 %1886  ;;  %v1890_v38 = vpop.xlane.xlu0 %1889 }
 0x5b8   : > { %3889 = vrcp.f32 %v1887_v36 }
 0x5b9   : > { %3891 = vrcp.f32 %v1890_v38 }
 0x5ba   : > { %v3884_v7 = vpop.eup %3883 }
 0x5bb   : > { %v1893_v40 = vpop.xlane.xlu1 %1892  ;;  %v1896_v41 = vpop.xlane.xlu0 %1895  ;;  %v1940_v46 = vmul.f32 %v3884_v7, %v4866_v5 }
 0x5bc   : > { %3893 = vrcp.f32 %v1893_v40 }
 0x5bd   : > { %3895 = vrcp.f32 %v1896_v41 }
 0x5be   : > { %v3886_v43 = vpop.eup %3885 }
 0x5bf   : > { %v1899_v44 = vpop.xlane.xlu1 %1898  ;;  %v1902_v10 = vpop.xlane.xlu0 %1901  ;;  %v1941_v47 = vmul.f32 %v3886_v43, %v4874_v55 }
 0x5c0   : > { %v3888_v53 = vpop.eup %3887  ;;  %3897 = vrcp.f32 %v1899_v44 }
 0x5c1   : > { %v1956_v54 = vpack.c.bf16 %v1941_v47, %v1940_v46  ;;  %3899 = vrcp.f32 %v1902_v10  ;;  %v1942_v59 = vmul.f32 %v3888_v53, %v4871_v11 }
 0x5c2   : > { %v3890_v19 = vpop.eup %3889 }
 0x5c3   : > { %v1943_v35 = vmul.f32 %v3890_v19, %v4881_v25  ;;  %v1905_v24 = vpop.xlane.xlu1 %1904  ;;  %3494 = vmatprep.mubr.msk.bf16.mxu0 %vm1779_vm0, %v1956_v54  ;;  %v1908_v37 = vpop.xlane.xlu0 %1907 }
 0x5c4   : > { %v3892_v61 = vpop.eup %3891  ;;  %3901 = vrcp.f32 %v1905_v24 }
 0x5c5   : > { %v1957_v62 = vpack.c.bf16 %v1943_v35, %v1942_v59  ;;  %3903 = vrcp.f32 %v1908_v37  ;;  %v1944_v42 = vmul.f32 %v3892_v61, %v4884_v34 }
 0x5c6   : > { %v3894_v4 = vpop.eup %3893 }
 0x5c7   : > { %v1911_v5 = vpop.xlane.xlu1 %1910  ;;  %3495 = vmatmul.mubr.msk.bf16.vlgmr.msra.gmra.mrb[40].mxu0 %vm1779_vm0, %v1957_v62  ;;  %v1914_v55 = vpop.xlane.xlu0 %1913  ;;  %v1945_v26 = vmul.f32 %v3894_v4, %v4891_v33 }
 0x5c8   : > { %v3896_v11 = vpop.eup %3895  ;;  %3905 = vrcp.f32 %v1911_v5 }
 0x5c9   : > { %v1958_v25 = vpack.c.bf16 %v1945_v26, %v1944_v42  ;;  %3907 = vrcp.f32 %v1914_v55  ;;  %v1946_v20 = vmul.f32 %v3896_v11, %v4894_v45 }
 0x5ca   : > { %v3898_v48 = vpop.eup %3897 }
 0x5cb   : > { %v1917_v56 = vpop.xlane.xlu1 %1916  ;;  %3498 = vmatprep.mubr.msk.bf16.mxu0 %vm1779_vm0, %v1958_v25  ;;  %v1920_v18 = vpop.xlane.xlu0 %1919  ;;  %v1947_v58 = vmul.f32 %v3898_v48, %v4901_v57 }
 0x5cc   : > { %v3900_v22 = vpop.eup %3899  ;;  %3909 = vrcp.f32 %v1917_v56 }
 0x5cd   : > { %v1959_v31 = vpack.c.bf16 %v1947_v58, %v1946_v20  ;;  %3911 = vrcp.f32 %v1920_v18  ;;  %v1948_v33 = vmul.f32 %v3900_v22, %v4904_v60 }
 0x5ce   : > { %v3902_v3 = vpop.eup %3901 }
 0x5cf   : > { %v1923_v34 = vpop.xlane.xlu1 %1922  ;;  %3499 = vmatmul.mubr.msk.bf16.gmra.mrb[44].mxu0 %vm1779_vm0, %v1959_v31  ;;  %v1949_v32 = vmul.f32 %v3902_v3, %v4911_v39  ;;  %v3904_v8 = vpop.eup %3903 }
 0x5d0   : > { %3913 = vrcp.f32 %v1923_v34  ;;  %v1950_v45 = vmul.f32 %v3904_v8, %v4913_v23 }
 0x5d1   : > { %v1960_v36 = vpack.c.bf16 %v1949_v32, %v1948_v33 }
 0x5d2   : > { %v3906_v38 = vpop.eup %3905 }
 0x5d3   : > { %3502 = vmatprep.mubr.msk.bf16.mxu0 %vm1779_vm0, %v1960_v36  ;;  %v1951_v57 = vmul.f32 %v3906_v38, %v4919_v6  ;;  %v3908_v40 = vpop.eup %3907 }
 0x5d4   : > { %v1952_v60 = vmul.f32 %v3908_v40, %v4921_v9  ;;  %v4973_v9 = vld [vmem:[%s703_s14] ss:$0 sm:$0xff] }
 0x5d5   : > { %v1961_v41 = vpack.c.bf16 %v1951_v57, %v1950_v45 }
 0x5d6   : > { %v3910_v7 = vpop.eup %3909 }
 0x5d7   : > { %3503 = vmatmul.mubr.msk.bf16.gmra.mrb[48].mxu0 %vm1779_vm0, %v1961_v41  ;;  %v1953_v39 = vmul.f32 %v3910_v7, %v4927_v12  ;;  %v3912_v43 = vpop.eup %3911 }
 0x5d8   : > { %v1954_v46 = vmul.f32 %v3912_v43, %v4929_v17 }
 0x5d9   : > { %v1962_v44 = vpack.c.bf16 %v1953_v39, %v1952_v60 }
 0x5da   : > { %v3914_v10 = vpop.eup %3913 }
 0x5db   : > { %3506 = vmatprep.mubr.msk.bf16.mxu0 %vm1779_vm0, %v1962_v44  ;;  %v1955_v23 = vmul.f32 %v3914_v10, %v4935_v21 }
 0x5dd   : > { %v1963_v6 = vpack.c.bf16 %v1955_v23, %v1954_v46 }
 0x5df   : > { %3507 = vmatmul.mubr.msk.bf16.gmra.mrb[52].mxu0 %vm1779_vm0, %v1963_v6 }
 0x69a   : > { %v3496_v47 = vpop.f32.mrb[40].mxu0 }
 0x69b   : > { %v2092_v12 = vmul.f32 %v3496_v47, %v4748_v52  ;;  %v2027_v53 = vpop.f32.mrb[41].mxu0 }
 0x69c   : > { %v2090_v54 = vmul.f32 %v2027_v53, %v4744_v50  ;;  %v3497_v19 = vpop.f32.mrb[42].mxu0 }
 0x69d   : > { %v2115_v17 = vadd.f32 %v4973_v9, %v2092_v12  ;;  %v2093_v21 = vmul.f32 %v3497_v19, %v4742_v49  ;;  %v2030_v59 = vpop.f32.mrb[43].mxu0 }
 0x69e   : > { %v2113_v35 = vadd.f32 %v4973_v9, %v2090_v54  ;;  %v2091_v24 = vmul.f32 %v2030_v59, %v4746_v51 }
 0x69f   : > { %v2131_v37 = vmul.f32 0.005, %v2115_v17  ;;  %v2116_v61 = vadd.f32 %v4973_v9, %v2093_v21 }
 0x6a0   : > { %v2129_v62 = vmul.f32 0.005, %v2113_v35  ;;  %v2114_v4 = vadd.f32 %v4973_v9, %v2091_v24 }
 0x6a1   : > { %v2132_v5 = vmul.f32 0.005, %v2116_v61  ;;  %v2147_v26 = vadd.f32 %v2131_v37, %v4748_v52 }
 0x6a2   : > { %v2130_v55 = vmul.f32 0.005, %v2114_v4  ;;  %v3500_v42 = vpop.f32.mrb[44].mxu0  ;;  %v2145_v56 = vadd.f32 %v2129_v62, %v4744_v50 }
 0x6a3   : > { %v2148_v11 = vadd.f32 %v2132_v5, %v4742_v49  ;;  %v2096_v25 = vmul.f32 %v3500_v42, %v4760_v2  ;;  %v2043_v48 = vpop.f32.mrb[45].mxu0 }
 0x6a4   : > { %v2146_v18 = vadd.f32 %v2130_v55, %v4746_v51  ;;  %v2094_v20 = vmul.f32 %v2043_v48, %v4756_v0  ;;  %v3501_v58 = vpop.f32.mrb[46].mxu0 }
 0x6a5   : > { %v4989_v22 = vpack.c.bf16 %v2148_v11, %v2147_v26  ;;  %v2119_v31 = vadd.f32 %v4973_v9, %v2096_v25  ;;  %v2097_v3 = vmul.f32 %v3501_v58, %v4754_v63  ;;  %v2046_v34 = vpop.f32.mrb[47].mxu0 }
 0x6a6   : > { %v4993_v52 = vpack.c.bf16 %v2146_v18, %v2145_v56  ;;  %v2117_v49 = vadd.f32 %v4973_v9, %v2094_v20  ;;  %v2095_v33 = vmul.f32 %v2046_v34, %v4758_v1 }
 0x6a7   : > { %2170 = vst [vmem:[#allocation2 + $0x8] sm:$0xff] %v4989_v22  ;;  %v2135_v50 = vmul.f32 0.005, %v2119_v31  ;;  %v2120_v51 = vadd.f32 %v4973_v9, %v2097_v3 }
 0x6a8   : > { %2169 = vst [vmem:[#allocation2] sm:$0xff] %v4993_v52  ;;  %v2133_v32 = vmul.f32 0.005, %v2117_v49  ;;  %v2118_v8 = vadd.f32 %v4973_v9, %v2095_v33  ;;  %v4211_v33 = vmov (!%p3082_p9), 0.0  }
 0x6a9   : > { %v2136_v36 = vmul.f32 0.005, %v2120_v51  ;;  %v2151_v57 = vadd.f32 %v2135_v50, %v4760_v2  ;;  %3510 = vmatprep.subr.bf16.mxu0 (!%p3082_p9), %v4211_v33  ;;  %3530 = vmatprep.subr.bf16.mxu1 (!%p3082_p9), %v4211_v33  ;;  %v3920_v50 = vld [vmem:[#allocation6 + $0x10] sm:$0xff] (!%p3082_p9)   ;;  %v3921_v51 = vld [vmem:[#allocation8 + $0x18] sm:$0xff] (!%p3082_p9)  }
 0x6aa   : > { %v2134_v38 = vmul.f32 0.005, %v2118_v8  ;;  %v3504_v45 = vpop.f32.mrb[48].mxu0  ;;  %v2149_v60 = vadd.f32 %v2133_v32, %v4756_v0  ;;  %3511 = vmatpush3.bf16.msra.mxu0 (!%p3082_p9), %v4993_v52  ;;  %3531 = vmatpush3.bf16.msra.mxu1 (!%p3082_p9), %v4993_v52  ;;  %v3919_v52 = vld [vmem:[#allocation8 + $0x10] sm:$0xff] (!%p3082_p9)   ;;  %v3922_v32 = vld [vmem:[#allocation6 + $0x18] sm:$0xff] (!%p3082_p9)   ;;  %v3923_v8 = vld [vmem:[#allocation8 + $0x20] sm:$0xff] (!%p3082_p9)  }
 0x6ab   : > { %v2152_v40 = vadd.f32 %v2136_v36, %v4754_v63  ;;  %v2100_v41 = vmul.f32 %v3504_v45, %v4772_v16  ;;  %v2059_v7 = vpop.f32.mrb[49].mxu0  ;;  %3512 = vmatprep.subr.bf16.mxu0 (!%p3082_p9), %v4211_v33  ;;  %3532 = vmatprep.subr.bf16.mxu1 (!%p3082_p9), %v4211_v33  ;;  %v3924_v36 = vld [vmem:[#allocation6 + $0x20] sm:$0xff] (!%p3082_p9)   ;;  %v3926_v45 = vld [vmem:[#allocation6 + $0x28] sm:$0xff] (!%p3082_p9)  }
 0x6ac   : > { %v2150_v39 = vadd.f32 %v2134_v38, %v4758_v1  ;;  %v2098_v43 = vmul.f32 %v2059_v7, %v4768_v14  ;;  %v3505_v44 = vpop.f32.mrb[50].mxu0  ;;  %3526 = vmatprep.mubr.msk.bf16.mxu0 (!%p3082_p9), %vm4212_vm2, %v4211_v33  ;;  %3546 = vmatprep.mubr.msk.bf16.mxu1 (!%p3082_p9), %vm4212_vm2, %v4211_v33  ;;  %v3925_v38 = vld [vmem:[#allocation8 + $0x28] sm:$0xff] (!%p3082_p9)   ;;  %v3930_v7 = vld [vmem:[#allocation6 + $0x38] sm:$0xff] (!%p3082_p9)  }
 0x6ad   : > { %v5007_v10 = vpack.c.bf16 %v2152_v40, %v2151_v57  ;;  %v2123_v46 = vadd.f32 %v4973_v9, %v2100_v41  ;;  %v2101_v23 = vmul.f32 %v3505_v44, %v4766_v13  ;;  %v2062_v6 = vpop.f32.mrb[51].mxu0  ;;  %v3927_v57 = vld [vmem:[#allocation8 + $0x30] sm:$0xff] (!%p3082_p9)   ;;  %v3929_v41 = vld [vmem:[#allocation8 + $0x38] sm:$0xff] (!%p3082_p9)  }
 0x6ae   : > { %v2163_v2 = vpack.c.bf16 %v2150_v39, %v2149_v60  ;;  %v2121_v63 = vadd.f32 %v4973_v9, %v2098_v43  ;;  %v2099_v47 = vmul.f32 %v2062_v6, %v4770_v15  ;;  %3513 = vmatpush3.bf16.msra.mxu0 (!%p3082_p9), %v4989_v22  ;;  %3533 = vmatpush3.bf16.msra.mxu1 (!%p3082_p9), %v4989_v22  ;;  %v3918_v22 = vld [vmem:[#allocation6 + $0x8] sm:$0xff] (!%p3082_p9)   ;;  %v3928_v40 = vld [vmem:[#allocation6 + $0x30] sm:$0xff] (!%p3082_p9)  }
 0x6af   : > { %2172 = vst [vmem:[#allocation2 + $0x18] sm:$0xff] %v5007_v10  ;;  %v2139_v0 = vmul.f32 0.005, %v2123_v46  ;;  %v2124_v1 = vadd.f32 %v4973_v9, %v2101_v23  ;;  %3514 = vmatprep.subr.bf16.mxu0 (!%p3082_p9), %v4211_v33  ;;  %3534 = vmatprep.subr.bf16.mxu1 (!%p3082_p9), %v4211_v33 }
 0x6b0   : > { %2171 = vst [vmem:[#allocation2 + $0x10] sm:$0xff] %v2163_v2  ;;  %v2137_v12 = vmul.f32 0.005, %v2121_v63  ;;  %v2122_v53 = vadd.f32 %v4973_v9, %v2099_v47 }
 0x6b1   : > { %v2140_v54 = vmul.f32 0.005, %v2124_v1  ;;  %v2155_v21 = vadd.f32 %v2139_v0, %v4772_v16 }
 0x6b2   : > { %v2138_v19 = vmul.f32 0.005, %v2122_v53  ;;  %v3508_v17 = vpop.f32.mrb[52].mxu0  ;;  %v2153_v37 = vadd.f32 %v2137_v12, %v4768_v14  ;;  %3515 = vmatpush3.bf16.msra.mxu0 (!%p3082_p9), %v2163_v2  ;;  %3535 = vmatpush3.bf16.msra.mxu1 (!%p3082_p9), %v2163_v2  ;;  %v3931_v12 = vld [vmem:[#allocation9] sm:$0xff] (!%p3082_p9)  }
 0x6b3   : > { %v2156_v59 = vadd.f32 %v2140_v54, %v4766_v13  ;;  %v2104_v35 = vmul.f32 %v3508_v17, %v4784_v30  ;;  %v2075_v24 = vpop.f32.mrb[53].mxu0  ;;  %3516 = vmatprep.subr.bf16.mxu0 (!%p3082_p9), %v4211_v33  ;;  %3536 = vmatprep.subr.bf16.mxu1 (!%p3082_p9), %v4211_v33  ;;  %v3933_v17 = vld [vmem:[#allocation9 + $0x10] sm:$0xff] (!%p3082_p9)  }
 0x6b4   : > { %v2154_v61 = vadd.f32 %v2138_v19, %v4770_v15  ;;  %v2102_v62 = vmul.f32 %v2075_v24, %v4780_v28  ;;  %v3509_v4 = vpop.f32.mrb[54].mxu0  ;;  %v3932_v19 = vld [vmem:[#allocation9 + $0x8] sm:$0xff] (!%p3082_p9)   ;;  %v3937_v24 = vld [vmem:[#allocation9 + $0x30] sm:$0xff] (!%p3082_p9)  }
 0x6b5   : > { %v2166_v5 = vpack.c.bf16 %v2156_v59, %v2155_v21  ;;  %v2127_v55 = vadd.f32 %v4973_v9, %v2104_v35  ;;  %v2105_v42 = vmul.f32 %v3509_v4, %v4778_v27  ;;  %v2078_v26 = vpop.f32.mrb[55].mxu0  ;;  %v3934_v21 = vld [vmem:[#allocation9 + $0x18] sm:$0xff] (!%p3082_p9)   ;;  %v3935_v59 = vld [vmem:[#allocation9 + $0x20] sm:$0xff] (!%p3082_p9)   ;;  %v3936_v35 = vld [vmem:[#allocation9 + $0x28] sm:$0xff] (!%p3082_p9)  }
 0x6b6   : > { %v2165_v11 = vpack.c.bf16 %v2154_v61, %v2153_v37  ;;  %v2125_v16 = vadd.f32 %v4973_v9, %v2102_v62  ;;  %v2103_v13 = vmul.f32 %v2078_v26, %v4782_v29  ;;  %3517 = vmatpush3.bf16.msra.mxu0 (!%p3082_p9), %v5007_v10  ;;  %3537 = vmatpush3.bf16.msra.mxu1 (!%p3082_p9), %v5007_v10  ;;  %v3938_v37 = vld [vmem:[#allocation9 + $0x38] sm:$0xff] (!%p3082_p9)   ;;  %v3939_v62 = vld [vmem:[#allocation11] sm:$0xff] (!%p3082_p9)   ;;  %v3940_v4 = vld [vmem:[#allocation11 + $0x8] sm:$0xff] (!%p3082_p9)  }
 0x6b7   : > { %2174 = vst [vmem:[#allocation2 + $0x28] sm:$0xff] %v2166_v5  ;;  %v2143_v25 = vmul.f32 0.005, %v2127_v55  ;;  %v2128_v14 = vadd.f32 %v4973_v9, %v2105_v42  ;;  %3518 = vmatprep.subr.bf16.mxu0 (!%p3082_p9), %v4211_v33  ;;  %3538 = vmatprep.subr.bf16.mxu1 (!%p3082_p9), %v4211_v33  ;;  %v3942_v55 = vld [vmem:[#allocation11 + $0x18] sm:$0xff] (!%p3082_p9)   ;;  %v3943_v42 = vld [vmem:[#allocation11 + $0x20] sm:$0xff] (!%p3082_p9)   ;;  %v3944_v26 = vld [vmem:[#allocation11 + $0x28] sm:$0xff] (!%p3082_p9)  }
 0x6b8   : > { %2173 = vst [vmem:[#allocation2 + $0x20] sm:$0xff] %v2165_v11  ;;  %v2141_v15 = vmul.f32 0.005, %v2125_v16  ;;  %v2126_v48 = vadd.f32 %v4973_v9, %v2103_v13  ;;  %v3917_v9 = vld [vmem:[#allocation8 + $0x8] sm:$0xff] (!%p3082_p9)   ;;  %v3946_v16 = vld [vmem:[#allocation11 + $0x38] sm:$0xff] (!%p3082_p9)   ;;  %v3947_v13 = vld [vmem:[#allocation12] sm:$0xff] (!%p3082_p9)  }
 0x6b9   : > { %v2144_v56 = vmul.f32 0.005, %v2128_v14  ;;  %v2159_v20 = vadd.f32 %v2143_v25, %v4784_v30  ;;  %v3916_v30 = vld [vmem:[#allocation6] sm:$0xff] (!%p3082_p9)   ;;  %v3948_v25 = vld [vmem:[#allocation12 + $0x8] sm:$0xff] (!%p3082_p9)   ;;  %v3949_v14 = vld [vmem:[#allocation12 + $0x10] sm:$0xff] (!%p3082_p9)  }
 0x6ba   : > { %v2142_v18 = vmul.f32 0.005, %v2126_v48  ;;  %v2157_v31 = vadd.f32 %v2141_v15, %v4780_v28  ;;  %2180 = sbr.rel (%p3082_p9) target bundleno = 2638 (0xa4e), region = 120  ;;  %3519 = vmatpush3.bf16.msra.mxu0 (!%p3082_p9), %v2165_v11  ;;  %3539 = vmatpush3.bf16.msra.mxu1 (!%p3082_p9), %v2165_v11  ;;  %v3083_v28 = vld [vmem:[%s5222_s28 + $0x4] sm:$0xf] (!%p3082_p9)  ;;  %v3945_v11 = vld [vmem:[#allocation11 + $0x30] sm:$0xff] (!%p3082_p9)  }
 0x6bb   : > { %v2160_v58 = vadd.f32 %v2144_v56, %v4778_v27  ;;  %3520 = vmatprep.subr.bf16.mxu0 (!%p3082_p9), %v4211_v33  ;;  %3540 = vmatprep.subr.bf16.mxu1 (!%p3082_p9), %v4211_v33  ;;  %v2181_v27 = vld [vmem:[%s5221_s24] sm:$0xf] (!%p3082_p9)  ;;  %v3950_v15 = vld [vmem:[#allocation12 + $0x18] sm:$0xff] (!%p3082_p9)   ;;  %v3952_v56 = vld [vmem:[#allocation12 + $0x28] sm:$0xff] (!%p3082_p9)  }
 0x6bc   : > { %v2158_v3 = vadd.f32 %v2142_v18, %v4782_v29  ;;  %v3915_v29 = vld [vmem:[#allocation8] sm:$0xff] (!%p3082_p9)  }
 0x6bd   : > { %v2168_v34 = vpack.c.bf16 %v2160_v58, %v2159_v20  ;;  %v3951_v48 = vld [vmem:[#allocation12 + $0x20] sm:$0xff] (!%p3082_p9)  }
 0x6be   : > { %v2167_v49 = vpack.c.bf16 %v2158_v3, %v2157_v31  ;;  %3521 = vmatpush3.bf16.msra.mxu0 (!%p3082_p9), %v2166_v5  ;;  %3541 = vmatpush3.bf16.msra.mxu1 (!%p3082_p9), %v2166_v5  ;;  %v3941_v5 = vld [vmem:[#allocation11 + $0x10] sm:$0xff] (!%p3082_p9)  }
 0x6bf   : > { %2176 = vst [vmem:[#allocation2 + $0x38] sm:$0xff] %v2168_v34  ;;  %3522 = vmatprep.subr.bf16.mxu0 (!%p3082_p9), %v4211_v33  ;;  %3542 = vmatprep.subr.bf16.mxu1 (!%p3082_p9), %v4211_v33 }
 0x6c0   : > { %2175 = vst [vmem:[#allocation2 + $0x30] sm:$0xff] %v2167_v49 }
 0x6c2   : > { %3523 = vmatpush3.bf16.msra.mxu0 %v2167_v49  ;;  %3543 = vmatpush3.bf16.msra.mxu1 %v2167_v49 }
 0x6c3   : > { %3524 = vmatprep.subr.bf16.mxu0 %v4211_v33  ;;  %3544 = vmatprep.subr.bf16.mxu1 %v4211_v33 }
 0x6c6   : > { %3525 = vmatpush3.bf16.msra.mxu0 %v2168_v34  ;;  %3545 = vmatpush3.bf16.msra.mxu1 %v2168_v34 }
 0x6c7   : > { %3550 = vmatprep.subr.bf16.mxu0 %v4211_v33  ;;  %3570 = vmatprep.subr.bf16.mxu1 %v4211_v33 }
 0x6c9   : > { %3527 = vmatmul.mubr.bf16.vlgmr.msra.gmra.mrb[0].mxu0 %v2181_v27  ;;  %3547 = vmatmul.mubr.bf16.vlgmr.msra.gmra.mrb[0].mxu1 %v3083_v28 }
 0x6ca   : > { %3551 = vmatpush3.bf16.msra.mxu0 %v3915_v29  ;;  %3571 = vmatpush3.bf16.msra.mxu1 %v3916_v30  ;;  %v3108_v30 = vld [vmem:[%s5223_s19] ss:$0 sm:$0xff] }
 0x6cb   : > { %3552 = vmatprep.subr.bf16.mxu0 %v4211_v33  ;;  %3572 = vmatprep.subr.bf16.mxu1 %v4211_v33 }
 0x6cc   : > { %3566 = vmatprep.mubr.msk.bf16.mxu0 %vm4212_vm2, %v4211_v33  ;;  %3586 = vmatprep.mubr.msk.bf16.mxu1 %vm4212_vm2, %v4211_v33 }
 0x6ce   : > { %3553 = vmatpush3.bf16.msra.mxu0 %v3917_v9  ;;  %3573 = vmatpush3.bf16.msra.mxu1 %v3918_v22 }
 0x6cf   : > { %3554 = vmatprep.subr.bf16.mxu0 %v4211_v33  ;;  %3574 = vmatprep.subr.bf16.mxu1 %v4211_v33 }
 0x6d2   : > { %3555 = vmatpush3.bf16.msra.mxu0 %v3919_v52  ;;  %3575 = vmatpush3.bf16.msra.mxu1 %v3920_v50 }
 0x6d3   : > { %3556 = vmatprep.subr.bf16.mxu0 %v4211_v33  ;;  %3576 = vmatprep.subr.bf16.mxu1 %v4211_v33 }
 0x6d6   : > { %3557 = vmatpush3.bf16.msra.mxu0 %v3921_v51  ;;  %3577 = vmatpush3.bf16.msra.mxu1 %v3922_v32 }
 0x6d7   : > { %3558 = vmatprep.subr.bf16.mxu0 %v4211_v33  ;;  %3578 = vmatprep.subr.bf16.mxu1 %v4211_v33 }
 0x6da   : > { %3559 = vmatpush3.bf16.msra.mxu0 %v3923_v8  ;;  %3579 = vmatpush3.bf16.msra.mxu1 %v3924_v36  ;;  %v3953_v8 = vld [vmem:[#allocation12 + $0x30] sm:$0xff]   ;;  %v3954_v36 = vld [vmem:[#allocation12 + $0x38] sm:$0xff]  }
 0x6db   : > { %3560 = vmatprep.subr.bf16.mxu0 %v4211_v33  ;;  %3580 = vmatprep.subr.bf16.mxu1 %v4211_v33 }
 0x6de   : > { %3561 = vmatpush3.bf16.msra.mxu0 %v3925_v38  ;;  %3581 = vmatpush3.bf16.msra.mxu1 %v3926_v45  ;;  %v3109_v38 = vld [vmem:[%s5224_s2] ss:$0 sm:$0xff] }
 0x6df   : > { %3562 = vmatprep.subr.bf16.mxu0 %v4211_v33  ;;  %3582 = vmatprep.subr.bf16.mxu1 %v4211_v33 }
 0x6e2   : > { %3563 = vmatpush3.bf16.msra.mxu0 %v3927_v57  ;;  %3583 = vmatpush3.bf16.msra.mxu1 %v3928_v40 }
 0x6e3   : > { %3564 = vmatprep.subr.bf16.mxu0 %v4211_v33  ;;  %3584 = vmatprep.subr.bf16.mxu1 %v4211_v33 }
 0x6e6   : > { %3565 = vmatpush3.bf16.msra.mxu0 %v3929_v41  ;;  %3585 = vmatpush3.bf16.msra.mxu1 %v3930_v7 }
 0x6e7   : > { %3590 = vmatprep.subr.bf16.mxu0 %v4211_v33  ;;  %3610 = vmatprep.subr.bf16.mxu1 %v4211_v33 }
 0x79c   : > { %v2216_v60 = vpop.f32.mrb[0].mxu0  ;;  %v2258_v39 = vpop.f32.mrb[0].mxu1 }
 0x79d   : > { %v2264_v43 = vsub.f32 %v2216_v60, %v2258_v39  ;;  %v2267_v44 = vadd.f32 %v2258_v39, %v2216_v60  ;;  %v2268_v10 = vmax.f32 %v2216_v60, %v2258_v39  ;;  %v3528_v46 = vpop.f32.mrb[1].mxu0  ;;  %v3548_v23 = vpop.f32.mrb[1].mxu1 }
 0x79e   : > { %v2219_v6 = vpop.f32.mrb[2].mxu0  ;;  %v2261_v2 = vpop.f32.mrb[2].mxu1 }
 0x79f   : > { %v2265_v63 = vand.u32 2147483647, %v2264_v43  ;;  %v2269_v47 = vmul.f32 0.5, %v2267_v44  ;;  %v3529_v0 = vpop.f32.mrb[3].mxu0  ;;  %v3549_v1 = vpop.f32.mrb[3].mxu1  ;;  %v2480_v61 = vpack.c.bf16 %v2268_v10, %v2268_v10 }
 0x7a0   : > { %v3118_v43 = vld [vmem:[%s5225_s4] ss:$0 sm:$0xff] }
 0x7a1   : > { %v2270_v53 = vpack.c.bf16 %v2265_v63, %v2265_v63  ;;  %v2287_v54 = vpack.c.bf16 %v2269_v47, %v2269_v47 }
 0x7a3   : > { %3567 = vmatmul.mubr.bf16.vlgmr.msra.gmra.mrb[4].mxu0 %v2287_v54  ;;  %3587 = vmatmul.mubr.bf16.vlgmr.msra.gmra.mrb[4].mxu1 %v2270_v53 }
 0x7a4   : > { %3591 = vmatpush3.bf16.msra.mxu0 %v3931_v12  ;;  %3606 = vmatprep.mubr.msk.bf16.mxu0 %vm4212_vm2, %v4211_v33 }
 0x7a5   : > { %3592 = vmatprep.subr.bf16.mxu0 %v4211_v33  ;;  %3626 = vmatprep.mubr.msk.bf16.mxu1 %vm4212_vm2, %v4211_v33 }
 0x7a6   : > { %3611 = vmatpush3.bf16.msra.mxu1 %v3939_v62 }
 0x7a7   : > { %3612 = vmatprep.subr.bf16.mxu1 %v4211_v33 }
 0x7a8   : > { %3593 = vmatpush3.bf16.msra.mxu0 %v3932_v19 }
 0x7a9   : > { %3594 = vmatprep.subr.bf16.mxu0 %v4211_v33 }
 0x7aa   : > { %3613 = vmatpush3.bf16.msra.mxu1 %v3940_v4 }
 0x7ab   : > { %3614 = vmatprep.subr.bf16.mxu1 %v4211_v33 }
 0x7ac   : > { %3595 = vmatpush3.bf16.msra.mxu0 %v3933_v17 }
 0x7ad   : > { %3596 = vmatprep.subr.bf16.mxu0 %v4211_v33 }
 0x7ae   : > { %3615 = vmatpush3.bf16.msra.mxu1 %v3941_v5 }
 0x7af   : > { %3616 = vmatprep.subr.bf16.mxu1 %v4211_v33 }
 0x7b0   : > { %3597 = vmatpush3.bf16.msra.mxu0 %v3934_v21 }
 0x7b1   : > { %3598 = vmatprep.subr.bf16.mxu0 %v4211_v33 }
 0x7b2   : > { %3617 = vmatpush3.bf16.msra.mxu1 %v3942_v55 }
 0x7b3   : > { %3618 = vmatprep.subr.bf16.mxu1 %v4211_v33 }
 0x7b4   : > { %3599 = vmatpush3.bf16.msra.mxu0 %v3935_v59 }
 0x7b5   : > { %3600 = vmatprep.subr.bf16.mxu0 %v4211_v33 }
 0x7b6   : > { %3619 = vmatpush3.bf16.msra.mxu1 %v3943_v42 }
 0x7b7   : > { %3620 = vmatprep.subr.bf16.mxu1 %v4211_v33 }
 0x7b8   : > { %3601 = vmatpush3.bf16.msra.mxu0 %v3936_v35 }
 0x7b9   : > { %3602 = vmatprep.subr.bf16.mxu0 %v4211_v33 }
 0x7ba   : > { %3621 = vmatpush3.bf16.msra.mxu1 %v3944_v26 }
 0x7bb   : > { %3622 = vmatprep.subr.bf16.mxu1 %v4211_v33 }
 0x7bc   : > { %3603 = vmatpush3.bf16.msra.mxu0 %v3937_v24 }
 0x7bd   : > { %3604 = vmatprep.subr.bf16.mxu0 %v4211_v33 }
 0x7be   : > { %3623 = vmatpush3.bf16.msra.mxu1 %v3945_v11 }
 0x7bf   : > { %3624 = vmatprep.subr.bf16.mxu1 %v4211_v33 }
 0x7c0   : > { %3605 = vmatpush3.bf16.msra.mxu0 %v3938_v37 }
 0x7c1   : > { %3630 = vmatprep.subr.bf16.mxu0 %v4211_v33 }
 0x7c2   : > { %3625 = vmatpush3.bf16.msra.mxu1 %v3946_v16 }
 0x7c3   : > { %3607 = vmatmul.mubr.bf16.vlgmr.msra.gmra.mrb[8].mxu0 %v2480_v61 }
 0x7c4   : > { %3646 = vmatprep.mubr.msk.bf16.mxu0 %vm4212_vm2, %v4211_v33  ;;  %3631 = vmatpush3.bf16.msra.mxu0 %v3947_v13 }
 0x7c5   : > { %3632 = vmatprep.subr.bf16.mxu0 %v4211_v33 }
 0x7c8   : > { %3633 = vmatpush3.bf16.msra.mxu0 %v3948_v25 }
 0x7c9   : > { %3634 = vmatprep.subr.bf16.mxu0 %v4211_v33 }
 0x7cc   : > { %3635 = vmatpush3.bf16.msra.mxu0 %v3949_v14 }
 0x7cd   : > { %3636 = vmatprep.subr.bf16.mxu0 %v4211_v33 }
 0x7d0   : > { %3637 = vmatpush3.bf16.msra.mxu0 %v3950_v15 }
 0x7d1   : > { %3638 = vmatprep.subr.bf16.mxu0 %v4211_v33 }
 0x7d4   : > { %3639 = vmatpush3.bf16.msra.mxu0 %v3951_v48 }
 0x7d5   : > { %3640 = vmatprep.subr.bf16.mxu0 %v4211_v33 }
 0x7d8   : > { %3641 = vmatpush3.bf16.msra.mxu0 %v3952_v56 }
 0x7d9   : > { %3642 = vmatprep.subr.bf16.mxu0 %v4211_v33 }
 0x7dc   : > { %3643 = vmatpush3.bf16.msra.mxu0 %v3953_v8 }
 0x7dd   : > { %3644 = vmatprep.subr.bf16.mxu0 %v4211_v33 }
 0x7e0   : > { %3645 = vmatpush3.bf16.msra.mxu0 %v3954_v36 }
 0x876   : > { %v2386_v18 = vpop.f32.mrb[4].mxu0  ;;  %v2474_v20 = vpop.f32.mrb[4].mxu1 }
 0x877   : > { %v2475_v58 = vadd.f32 %v2474_v20, %v2386_v18  ;;  %v3568_v31 = vpop.f32.mrb[5].mxu0  ;;  %v3588_v3 = vpop.f32.mrb[5].mxu1 }
 0x878   : > { %v2389_v34 = vpop.f32.mrb[6].mxu0  ;;  %v2477_v49 = vpop.f32.mrb[6].mxu1 }
 0x879   : > { %v3569_v27 = vpop.f32.mrb[7].mxu0  ;;  %v3589_v28 = vpop.f32.mrb[7].mxu1 }
 0x896   : > { %v2579_v29 = vpop.f32.mrb[8].mxu0 }
 0x897   : > { %v2585_v9 = vadd.f32 %v2579_v29, %v2475_v58  ;;  %v3608_v22 = vpop.f32.mrb[9].mxu0 }
 0x898   : > { %v2582_v52 = vpop.f32.mrb[10].mxu0 }
 0x899   : > { %v2593_v50 = vadd.f32 %v3108_v30, %v2585_v9  ;;  %v3609_v51 = vpop.f32.mrb[11].mxu0 }
 0x89b   : > { %v2594_v32 = vpack.c.bf16 %v2593_v50, %v2593_v50 }
 0x89d   : > { %3627 = vmatmul.mubr.bf16.vlgmr.msra.gmra.mrb[8].mxu1 %v2594_v32 }
 0x970   : > { %v2700_v45 = vpop.f32.mrb[8].mxu1 }
 0x971   : > { %v2701_v57 = vadd.f32 %v3109_v38, %v2700_v45  ;;  %v3628_v40 = vpop.f32.mrb[9].mxu1 }
 0x972   : > { %v2703_v41 = vpop.f32.mrb[10].mxu1 }
 0x973   : > { %v2706_v7 = vmax.f32 %v2701_v57, 0.0  ;;  %v3629_v60 = vpop.f32.mrb[11].mxu1 }
 0x975   : > { %v2707_v39 = vpack.c.bf16 %v2706_v7, %v2706_v7 }
 0x977   : > { %3647 = vmatmul.mubr.bf16.vlgmr.msra.gmra.mrb[12].mxu0 %v2707_v39 }
 0xa4a   : > { %v2813_v44 = vpop.f32.mrb[12].mxu0 }
 0xa4b   : > { %v2814_v33 = vadd.f32 %v3118_v43, %v2813_v44  ;;  %v3648_v10 = vpop.f32.mrb[13].mxu0 }
 0xa4c   : > { %v2816_v46 = vpop.f32.mrb[14].mxu0 }
 0xa4d   : > { %2819 = vst [vmem:[#allocation14] sm:$0xff] %v2814_v33  ;;  %v3649_v23 = vpop.f32.mrb[15].mxu0 }
 0xa4e PF: > { %p3759_p10 = scmp.eq.s32.totalorder %s4325_s0, 1  ;;  %s4213_s8 = smov [#allocation14]  }
 0xa4f   : > { %s2827_s18 = sshll.u32 %s4213_s8, 4  ;;  %s2828_s18 = int_to_ptr.vmem [resolvable:$true] %s2827_s18 }
 0xa50   : > { %s4125_s17 = scalar_lea.vmem %s2828_s18, 128  ;;  %p4132_p3 = scmp.lt.s32.totalorder %s2828_s18, %s2828_s18 }
 0xa51   : > { %p4126_p12 = scmp.ne.s32.totalorder %s2828_s18, %s4125_s17  ;;  %p4133_p11 = scmp.lt.s32.totalorder %s4125_s17, %s4125_s17 }
 0xa53   : > { %p4127_p8 = pnand %p4126_p12, %p3759_p10  ;;  %p4134_p6 = por %p4133_p11, %p4132_p3 }
 0xa55   : > { %p4128_p1 = pneg %p4127_p8 }
 0xa57   : > { %p4135_p4 = pnand %p4134_p6, %p4128_p1 }
 0xa59   : > { %4138 = shalt.err (!%p4135_p4)
}
 0xa5a   : > { %s5226_s24 = sld [smem:[#allocation31_spill]] }
 0xa60   : > { %s5227_s23 = smov %s5226_s24  ;;  %s4139_s22 = scalar_lea.hbm %s5226_s24, 128 }
 0xa61   : > { %p4140_p13 = scmp.ne.s32.totalorder %s5227_s23, %s4139_s22  ;;  %p4145_p5 = scmp.lt.u32.totalorder %s4139_s22, %s5227_s23 }
 0xa63   : > { %p4141_p0 = pnand %p4140_p13, %p3759_p10 }
 0xa65   : > { %p4142_p2 = pneg %p4141_p0 }
 0xa67   : > { %p4147_p7 = pnand %p4145_p5, %p4142_p2 }
 0xa69   : > { %4150 = shalt.err (!%p4147_p7)
}
 0xa6a   : > { %3725 = dma.vmem_to_hbm [thread:$0]  (%p3759_p10), %s2828_s18, 128, %s5227_s23, [#allocation5]  }
 0xa6b   : > { %4184 = dma.done.wait (%p3759_p10), [#allocation5], 128  }
 0xa6c   : > { %4186 = vsyncadd (%p3759_p10), [#allocation5], 4294967168 }
 0xa6d PF: > { %p31_p9 = scmp.ge.s32.totalorder %s4476_s1, 4   ;;  %s5228_s24 = smov %s4193_s25 }
 0xa6e   : > { %s5229_s25 = smov %s4197_s26  ;;  %s5230_s26 = smov %s4487_s6 }
 0xa6f   : > { %s5231_s27 = smov %s4476_s1  ;;  %33 = sbr.rel (!%p31_p9) target bundleno = 20 (0x14), region = 171 }
 0xa76   :  { %2840 = vsyncpa [#allocation4], 1 }
 0xa77   :  { %2842 = vsyncpa [#allocation4 + $0x1], 1 }
 0xa78   :  { %2843 = vsyncpa [#allocation7], 1 }
 0xa79   :  { %2844 = vsyncpa [#allocation10], 1 }
 0xa7a   :  { %2845 = vsyncpa [#allocation13], 1 }
 0xa7b   :  { %2846 = vsyncpa [#allocation5], 1 }
 0xa7c   :  { %2848 = vsyncpa [#allocation5 + $0x1], 1 }

</bundles_post_ra>
